<compile_context>
chip_gen: v5e
topology: v5e:2x2
jax: 0.10.0
libtpu: 0.0.40
codegen_flags: <defaults>
</compile_context>

<pallas_src>
import functools

import jax
import jax.numpy as jnp
from jax.experimental import pallas as pl
from jax.experimental.pallas import tpu as pltpu

KERNEL_SIZE = 7
PAD = 3  # padding = 3 for kernel_size 7


def _x_block_budget_bytes():
    """Per-block x budget in bytes, generation-aware (smaller on v7x)."""
    try:
        info = pltpu.get_tpu_info()
        vmem = int(getattr(info, "vmem_capacity_bytes", 64 << 20))
    except Exception:  # not on TPU hardware / API unavailable
        vmem = 64 << 20
    # Leave room for double-buffering, taps residency, out block and scratch.
    return max(1 << 20, min(8 << 20, vmem // 12))


def _pick_channel_tile(C, HW, itemsize, budget):
    """Channel-tile height: a multiple of 8 dividing C within the VMEM budget,
    else the smallest legal multiple-of-8 divisor, else full C (C<8 or C%8!=0,
    which is the only other block shape legal under the (8,128) rule)."""
    cands = [d for d in range(8, C + 1, 8) if C % d == 0]
    fitting = [d for d in cands if d * HW * itemsize <= budget]
    if fitting:
        return max(fitting)
    if cands:
        return min(cands)
    return C


def _build_masked_taps(weight, H, W):
    """(1, 2, K, K) conv weight -> (2*K*K, H*W) rows of tap * pad-validity.

    Row (kh*K + kw)*2 + ci holds weight[0, ci, kh, kw] at every flat output
    position p = h*W + w whose conv source (h+kh-PAD, w+kw-PAD) is in bounds,
    and 0 elsewhere (implements the conv's zero padding; also zeroes the
    lanes that would otherwise wrap across rows under the flat roll).
    """
    K = KERNEL_SIZE
    wt = weight.reshape(2, K, K).astype(jnp.float32)
    kh = jnp.arange(K)
    kw = jnp.arange(K)
    hh = jnp.arange(H)
    ww = jnp.arange(W)
    vh = ((hh[None, :] + kh[:, None] - PAD) >= 0) & (
        (hh[None, :] + kh[:, None] - PAD) < H)                      # (K, H)
    vw = ((ww[None, :] + kw[:, None] - PAD) >= 0) & (
        (ww[None, :] + kw[:, None] - PAD) < W)                      # (K, W)
    valid = (vh[:, None, :, None] & vw[None, :, None, :]).astype(jnp.float32)  # (K,K,H,W)
    taps = wt[:, :, :, None, None] * valid[None]                    # (2,K,K,H,W)
    taps = jnp.transpose(taps, (1, 2, 0, 3, 4))                     # (K,K,2,H,W)
    return taps.reshape(K * K * 2, H * W)


def _spatial_attention_kernel(x_ref, taps_ref, o_ref, sum_sc, max_sc, *, C, W):
    # x_ref   : (1, tc, HW)     VMEM, lane-dense channel block
    # taps_ref: (2*K*K, HW)     VMEM, boundary-masked weight rows (resident)
    # o_ref   : (1, 1, HW)      VMEM, lane-dense output row
    # sum_sc  : (8, HW) f32     running channel sum (sublane-wide partials)
    # max_sc  : (8, HW) f32     running channel max (sublane-wide partials)
    K = KERNEL_SIZE
    c = pl.program_id(1)
    tc = x_ref.shape[1]
    HW = x_ref.shape[2]

    @pl.when(c == 0)
    def _init():
        sum_sc[...] = jnp.zeros_like(sum_sc)
        max_sc[...] = jnp.full_like(max_sc, -jnp.inf)

    # ---- streaming channel reduction (hot, HBM-bound part) ----
    if tc % 8 == 0:
        # Pure elementwise vreg add/max into (8, HW) partials; the 8->1
        # cross-sublane collapse is deferred to finalize (keeps XLU free here).
        psum = x_ref[0, 0:8, :].astype(jnp.float32)                 # (8, HW)
        pmax = psum
        for g in range(1, tc // 8):
            blk = x_ref[0, 8 * g:8 * (g + 1), :].astype(jnp.float32)
            psum = psum + blk
            pmax = jnp.maximum(pmax, blk)
        sum_sc[...] = sum_sc[...] + psum
        max_sc[...] = jnp.maximum(max_sc[...], pmax)
    else:
        # Full-C block with C < 8 (or C % 8 != 0): small one-shot reduce.
        xb = x_ref[0].astype(jnp.float32)                           # (tc, HW)
        sum_sc[0:1, :] = sum_sc[0:1, :] + jnp.sum(xb, axis=0, keepdims=True)
        max_sc[0:1, :] = jnp.maximum(max_sc[0:1, :],
                                     jnp.max(xb, axis=0, keepdims=True))

    # ---- finalize: 7x7 conv as shared-roll shift-and-MAC, then sigmoid ----
    @pl.when(c == pl.num_programs(1) - 1)
    def _finalize():
        avg = jnp.sum(sum_sc[...], axis=0, keepdims=True) * (1.0 / C)  # (1, HW)
        mx = jnp.max(max_sc[...], axis=0, keepdims=True)               # (1, HW)
        pooled = jnp.concatenate([avg, mx], axis=0)                    # (2, HW)

        # 49 taps: ONE roll per (kh, kw) shared by avg/max; independent
        # accumulators break the serial VPU chain behind the XLU rolls.
        n_acc = 4 if HW <= 8192 else 2
        accs = [jnp.zeros((2, HW), jnp.float32) for _ in range(n_acc)]
        t = 0
        for kh in range(K):
            for kw in range(K):
                delta = (kh - PAD) * W + (kw - PAD)
                shift = (-delta) % HW
                shifted = pooled if shift == 0 else pltpu.roll(
                    pooled, shift=shift, axis=1)
                accs[t % n_acc] = accs[t % n_acc] + (
                    shifted * taps_ref[2 * t:2 * t + 2, :])
                t += 1
        total = accs[0]
        for a in accs[1:]:
            total = total + a                                         # (2, HW)
        out = total[0:1, :] + total[1:2, :]                           # (1, HW)
        o_ref[0] = jax.nn.sigmoid(out).astype(o_ref.dtype)


def spatial_attention(x, weight):
    """x: (B, C, H, W), weight: (1, 2, K, K) -> (B, 1, H, W) attention map."""
    B, C, H, W = x.shape
    K = KERNEL_SIZE
    HW = H * W
    itemsize = jnp.dtype(x.dtype).itemsize

    budget = _x_block_budget_bytes()
    tc = _pick_channel_tile(C, HW, itemsize, budget)
    num_c = C // tc

    x_flat = x.reshape(B, C, HW)                   # lane-dense last dim
    taps = _build_masked_taps(weight, H, W)        # (2*K*K, HW), no sublane pad

    kernel = functools.partial(_spatial_attention_kernel, C=C, W=W)

    # Mem-bound cost estimate (dominant term: the C*HW pooling read).
    flops = int(B * (2 * C * HW + 2 * 2 * K * K * HW))
    transcendentals = int(B * HW)
    bytes_accessed = int(B * C * HW * itemsize + taps.size * 4 + B * HW * itemsize)

    # VMEM: 2x double-buffered x block + 2x taps (98->104 row pad) + out + scratch.
    taps_rows_pad = ((2 * K * K + 7) // 8) * 8
    vmem_need = (2 * tc * HW * itemsize
                 + 2 * taps_rows_pad * HW * 4
                 + 2 * 8 * HW * itemsize
                 + 2 * 8 * HW * 4)
    vmem_limit = int(min(max(vmem_need + (4 << 20), 16 << 20), 64 << 20))

    # TODO(synk): for B == 1 on v7x (2 TensorCores) the "parallel" B axis
    # leaves one core idle; splitting the C reduction across cores would fix it.
    out_flat = pl.pallas_call(
        kernel,
        out_shape=jax.ShapeDtypeStruct((B, 1, HW), x.dtype),
        grid_spec=pltpu.PrefetchScalarGridSpec(
            num_scalar_prefetch=0,
            grid=(B, num_c),
            in_specs=[
                pl.BlockSpec((1, tc, HW), lambda b, c: (b, c, 0)),
                pl.BlockSpec((2 * K * K, HW), lambda b, c: (0, 0)),
            ],
            out_specs=pl.BlockSpec((1, 1, HW), lambda b, c: (b, 0, 0)),
            scratch_shapes=[
                pltpu.VMEM((8, HW), jnp.float32),   # running channel sum
                pltpu.VMEM((8, HW), jnp.float32),   # running channel max
            ],
        ),
        compiler_params=pltpu.CompilerParams(
            dimension_semantics=("parallel", "arbitrary"),
            vmem_limit_bytes=vmem_limit),
        cost_estimate=pl.CostEstimate(
            flops=flops, transcendentals=transcendentals,
            bytes_accessed=bytes_accessed),
    )(x_flat, taps)

    return out_flat.reshape(B, 1, H, W)


def reference(x, weight):
    avg = jnp.mean(x, axis=1, keepdims=True)
    mx = jnp.max(x, axis=1, keepdims=True)
    pool = jnp.concatenate([avg, mx], axis=1)
    out = jax.lax.conv_general_dilated(
        pool, weight, window_strides=(1, 1),
        padding=[(PAD, PAD), (PAD, PAD)],
        dimension_numbers=("NCHW", "OIHW", "NCHW"))
    return jax.nn.sigmoid(out)


if __name__ == "__main__":
    key = jax.random.PRNGKey(0)
    kx, kw = jax.random.split(key)

    B, C, H, W = 2, 4, 16, 16
    x = jax.random.normal(kx, (B, C, H, W), dtype=jnp.float32)

    # Deterministic Conv2d(2, 1, 7, bias=False) weight init
    # (PyTorch default: U(-1/sqrt(fan_in), 1/sqrt(fan_in)), fan_in = 2*7*7).
    fan_in = 2 * KERNEL_SIZE * KERNEL_SIZE
    bound = 1.0 / (fan_in ** 0.5)
    weight = jax.random.uniform(
        kw, (1, 2, KERNEL_SIZE, KERNEL_SIZE),
        minval=-bound, maxval=bound, dtype=jnp.float32)

    out = spatial_attention(x, weight)
    out = jax.block_until_ready(out)

    ref = reference(x, weight)
    assert out.shape == (B, 1, H, W)
    assert jnp.allclose(out, ref, atol=1e-5, rtol=1e-5), (
        float(jnp.max(jnp.abs(out - ref))))

    print("KERNEL_OK")
</pallas_src>

<mosaic_0001>
module attributes {stable_mosaic.version = 11 : i64} {
  func.func @_spatial_attention_kernel(%arg0: i32, %arg1: i32, %arg2: memref<1x4x256xf32, #tpu.memory_space<vmem>>, %arg3: memref<98x256xf32, #tpu.memory_space<vmem>>, %arg4: memref<1x1x256xf32, #tpu.memory_space<vmem>>, %arg5: memref<8x256xf32, #tpu.memory_space<vmem>>, %arg6: memref<8x256xf32, #tpu.memory_space<vmem>>) attributes {dimension_semantics = [#tpu.dimension_semantics<parallel>, #tpu.dimension_semantics<arbitrary>], iteration_bounds = array<i64: 2, 1>, scalar_prefetch = 0 : i64, scratch_operands = 2 : i64, tpu.core_type = #tpu.core_type<tc>, window_params = [{transform_indices = @transform_0, window_bounds = array<i64: 1, 4, 256>}, {pipeline_mode = #tpu.pipeline_mode<synchronous>, transform_indices = @transform_1, window_bounds = array<i64: 98, 256>}, {transform_indices = @transform_2, window_bounds = array<i64: 1, 1, 256>}]} {
    %c0_i32 = arith.constant 0 : i32
    %0 = arith.cmpi eq, %arg1, %c0_i32 : i32
    %1 = arith.extui %0 : i1 to i32
    %c0_i32_0 = arith.constant 0 : i32
    %2 = arith.cmpi ne, %1, %c0_i32_0 : i32
    scf.if %2 {
      %cst_14 = arith.constant 0.000000e+00 : f32
      %18 = vector.broadcast %cst_14 : f32 to vector<8x256xf32>
      %c0_15 = arith.constant 0 : index
      %c0_16 = arith.constant 0 : index
      %19 = vector.load %arg5[%c0_15, %c0_16] : memref<8x256xf32, #tpu.memory_space<vmem>>, vector<8x256xf32>
      tpu.vector_store %arg5[%c0_15, %c0_16], %18 {strides = array<i32>} : memref<8x256xf32, #tpu.memory_space<vmem>>, vector<8x256xf32>,
      %cst_17 = arith.constant 0xFF800000 : f32
      %20 = vector.broadcast %cst_17 : f32 to vector<8x256xf32>
      %c0_18 = arith.constant 0 : index
      %c0_19 = arith.constant 0 : index
      %21 = vector.load %arg6[%c0_18, %c0_19] : memref<8x256xf32, #tpu.memory_space<vmem>>, vector<8x256xf32>
      tpu.vector_store %arg6[%c0_18, %c0_19], %20 {strides = array<i32>} : memref<8x256xf32, #tpu.memory_space<vmem>>, vector<8x256xf32>,
    } else {
    }
    %c0 = arith.constant 0 : index
    %c0_1 = arith.constant 0 : index
    %c0_2 = arith.constant 0 : index
    %3 = vector.load %arg2[%c0, %c0_1, %c0_2] : memref<1x4x256xf32, #tpu.memory_space<vmem>>, vector<1x4x256xf32>
    %4 = vector.shape_cast %3 : vector<1x4x256xf32> to vector<4x256xf32>
    %c0_3 = arith.constant 0 : index
    %c0_4 = arith.constant 0 : index
    %5 = vector.load %arg5[%c0_3, %c0_4] : memref<8x256xf32, #tpu.memory_space<vmem>>, vector<1x256xf32>
    %cst = arith.constant dense<0.000000e+00> : vector<256xf32>
    %6 = vector.multi_reduction <add>, %4, %cst [0] : vector<4x256xf32> to vector<256xf32>
    %7 = vector.shape_cast %6 : vector<256xf32> to vector<1x256xf32>
    %8 = arith.addf %5, %7 : vector<1x256xf32>
    %c0_5 = arith.constant 0 : index
    %c0_6 = arith.constant 0 : index
    %9 = vector.load %arg5[%c0_5, %c0_6] : memref<8x256xf32, #tpu.memory_space<vmem>>, vector<1x256xf32>
    tpu.vector_store %arg5[%c0_5, %c0_6], %8 {strides = array<i32>} : memref<8x256xf32, #tpu.memory_space<vmem>>, vector<1x256xf32>,
    %c0_7 = arith.constant 0 : index
    %c0_8 = arith.constant 0 : index
    %10 = vector.load %arg6[%c0_7, %c0_8] : memref<8x256xf32, #tpu.memory_space<vmem>>, vector<1x256xf32>
    %cst_9 = arith.constant dense<0xFF800000> : vector<256xf32>
    %11 = vector.multi_reduction <maximumf>, %4, %cst_9 [0] : vector<4x256xf32> to vector<256xf32>
    %12 = vector.shape_cast %11 : vector<256xf32> to vector<1x256xf32>
    %13 = arith.maximumf %10, %12 : vector<1x256xf32>
    %c0_10 = arith.constant 0 : index
    %c0_11 = arith.constant 0 : index
    %14 = vector.load %arg6[%c0_10, %c0_11] : memref<8x256xf32, #tpu.memory_space<vmem>>, vector<1x256xf32>
    tpu.vector_store %arg6[%c0_10, %c0_11], %13 {strides = array<i32>} : memref<8x256xf32, #tpu.memory_space<vmem>>, vector<1x256xf32>,
    %c0_i32_12 = arith.constant 0 : i32
    %15 = arith.cmpi eq, %arg1, %c0_i32_12 : i32
    %16 = arith.extui %15 : i1 to i32
    %c0_i32_13 = arith.constant 0 : i32
    %17 = arith.cmpi ne, %16, %c0_i32_13 : i32
    scf.if %17 {
      %c0_14 = arith.constant 0 : index
      %c0_15 = arith.constant 0 : index
      %18 = vector.load %arg5[%c0_14, %c0_15] : memref<8x256xf32, #tpu.memory_space<vmem>>, vector<8x256xf32>
      %cst_16 = arith.constant dense<0.000000e+00> : vector<256xf32>
      %19 = vector.multi_reduction <add>, %18, %cst_16 [0] : vector<8x256xf32> to vector<256xf32>
      %20 = vector.shape_cast %19 : vector<256xf32> to vector<1x256xf32>
      %cst_17 = arith.constant 2.500000e-01 : f32
      %21 = vector.broadcast %cst_17 : f32 to vector<1x256xf32>
      %22 = arith.mulf %20, %21 : vector<1x256xf32>
      %c0_18 = arith.constant 0 : index
      %c0_19 = arith.constant 0 : index
      %23 = vector.load %arg6[%c0_18, %c0_19] : memref<8x256xf32, #tpu.memory_space<vmem>>, vector<8x256xf32>
      %cst_20 = arith.constant dense<0xFF800000> : vector<256xf32>
      %24 = vector.multi_reduction <maximumf>, %23, %cst_20 [0] : vector<8x256xf32> to vector<256xf32>
      %25 = vector.shape_cast %24 : vector<256xf32> to vector<1x256xf32>
      %26 = tpu.concatenate %22, %25 in 0 : vector<1x256xf32>, vector<1x256xf32> -> vector<2x256xf32>
      %cst_21 = arith.constant 0.000000e+00 : f32
      %27 = vector.broadcast %cst_21 : f32 to vector<2x256xf32>
      %cst_22 = arith.constant 0.000000e+00 : f32
      %28 = vector.broadcast %cst_22 : f32 to vector<2x256xf32>
      %cst_23 = arith.constant 0.000000e+00 : f32
      %29 = vector.broadcast %cst_23 : f32 to vector<2x256xf32>
      %cst_24 = arith.constant 0.000000e+00 : f32
      %30 = vector.broadcast %cst_24 : f32 to vector<2x256xf32>
      %c51_i32 = arith.constant 51 : i32
      %31 = tpu.dynamic_rotate %26 by %c51_i32 dim 1 : vector<2x256xf32>, i32 -> vector<2x256xf32>
      %c0_25 = arith.constant 0 : index
      %c0_26 = arith.constant 0 : index
      %32 = vector.load %arg3[%c0_25, %c0_26] : memref<98x256xf32, #tpu.memory_space<vmem>>, vector<2x256xf32>
      %33 = arith.mulf %31, %32 : vector<2x256xf32>
      %34 = arith.addf %27, %33 : vector<2x256xf32>
      %c50_i32 = arith.constant 50 : i32
      %35 = tpu.dynamic_rotate %26 by %c50_i32 dim 1 : vector<2x256xf32>, i32 -> vector<2x256xf32>
      %c2 = arith.constant 2 : index
      %c0_27 = arith.constant 0 : index
      %36 = vector.load %arg3[%c2, %c0_27] : memref<98x256xf32, #tpu.memory_space<vmem>>, vector<2x256xf32>
      %37 = arith.mulf %35, %36 : vector<2x256xf32>
      %38 = arith.addf %28, %37 : vector<2x256xf32>
      %c49_i32 = arith.constant 49 : i32
      %39 = tpu.dynamic_rotate %26 by %c49_i32 dim 1 : vector<2x256xf32>, i32 -> vector<2x256xf32>
      %c4 = arith.constant 4 : index
      %c0_28 = arith.constant 0 : index
      %40 = vector.load %arg3[%c4, %c0_28] : memref<98x256xf32, #tpu.memory_space<vmem>>, vector<2x256xf32>
      %41 = arith.mulf %39, %40 : vector<2x256xf32>
      %42 = arith.addf %29, %41 : vector<2x256xf32>
      %c48_i32 = arith.constant 48 : i32
      %43 = tpu.dynamic_rotate %26 by %c48_i32 dim 1 : vector<2x256xf32>, i32 -> vector<2x256xf32>
      %c6 = arith.constant 6 : index
      %c0_29 = arith.constant 0 : index
      %44 = vector.load %arg3[%c6, %c0_29] : memref<98x256xf32, #tpu.memory_space<vmem>>, vector<2x256xf32>
      %45 = arith.mulf %43, %44 : vector<2x256xf32>
      %46 = arith.addf %30, %45 : vector<2x256xf32>
      %c47_i32 = arith.constant 47 : i32
      %47 = tpu.dynamic_rotate %26 by %c47_i32 dim 1 : vector<2x256xf32>, i32 -> vector<2x256xf32>
      %c8 = arith.constant 8 : index
      %c0_30 = arith.constant 0 : index
      %48 = vector.load %arg3[%c8, %c0_30] : memref<98x256xf32, #tpu.memory_space<vmem>>, vector<2x256xf32>
      %49 = arith.mulf %47, %48 : vector<2x256xf32>
      %50 = arith.addf %34, %49 : vector<2x256xf32>
      %c46_i32 = arith.constant 46 : i32
      %51 = tpu.dynamic_rotate %26 by %c46_i32 dim 1 : vector<2x256xf32>, i32 -> vector<2x256xf32>
      %c10 = arith.constant 10 : index
      %c0_31 = arith.constant 0 : index
      %52 = vector.load %arg3[%c10, %c0_31] : memref<98x256xf32, #tpu.memory_space<vmem>>, vector<2x256xf32>
      %53 = arith.mulf %51, %52 : vector<2x256xf32>
      %54 = arith.addf %38, %53 : vector<2x256xf32>
      %c45_i32 = arith.constant 45 : i32
      %55 = tpu.dynamic_rotate %26 by %c45_i32 dim 1 : vector<2x256xf32>, i32 -> vector<2x256xf32>
      %c12 = arith.constant 12 : index
      %c0_32 = arith.constant 0 : index
      %56 = vector.load %arg3[%c12, %c0_32] : memref<98x256xf32, #tpu.memory_space<vmem>>, vector<2x256xf32>
      %57 = arith.mulf %55, %56 : vector<2x256xf32>
      %58 = arith.addf %42, %57 : vector<2x256xf32>
      %c35_i32 = arith.constant 35 : i32
      %59 = tpu.dynamic_rotate %26 by %c35_i32 dim 1 : vector<2x256xf32>, i32 -> vector<2x256xf32>
      %c14 = arith.constant 14 : index
      %c0_33 = arith.constant 0 : index
      %60 = vector.load %arg3[%c14, %c0_33] : memref<98x256xf32, #tpu.memory_space<vmem>>, vector<2x256xf32>
      %61 = arith.mulf %59, %60 : vector<2x256xf32>
      %62 = arith.addf %46, %61 : vector<2x256xf32>
      %c34_i32 = arith.constant 34 : i32
      %63 = tpu.dynamic_rotate %26 by %c34_i32 dim 1 : vector<2x256xf32>, i32 -> vector<2x256xf32>
      %c16 = arith.constant 16 : index
      %c0_34 = arith.constant 0 : index
      %64 = vector.load %arg3[%c16, %c0_34] : memref<98x256xf32, #tpu.memory_space<vmem>>, vector<2x256xf32>
      %65 = arith.mulf %63, %64 : vector<2x256xf32>
      %66 = arith.addf %50, %65 : vector<2x256xf32>
      %c33_i32 = arith.constant 33 : i32
      %67 = tpu.dynamic_rotate %26 by %c33_i32 dim 1 : vector<2x256xf32>, i32 -> vector<2x256xf32>
      %c18 = arith.constant 18 : index
      %c0_35 = arith.constant 0 : index
      %68 = vector.load %arg3[%c18, %c0_35] : memref<98x256xf32, #tpu.memory_space<vmem>>, vector<2x256xf32>
      %69 = arith.mulf %67, %68 : vector<2x256xf32>
      %70 = arith.addf %54, %69 : vector<2x256xf32>
      %c32_i32 = arith.constant 32 : i32
      %71 = tpu.dynamic_rotate %26 by %c32_i32 dim 1 : vector<2x256xf32>, i32 -> vector<2x256xf32>
      %c20 = arith.constant 20 : index
      %c0_36 = arith.constant 0 : index
      %72 = vector.load %arg3[%c20, %c0_36] : memref<98x256xf32, #tpu.memory_space<vmem>>, vector<2x256xf32>
      %73 = arith.mulf %71, %72 : vector<2x256xf32>
      %74 = arith.addf %58, %73 : vector<2x256xf32>
      %c31_i32 = arith.constant 31 : i32
      %75 = tpu.dynamic_rotate %26 by %c31_i32 dim 1 : vector<2x256xf32>, i32 -> vector<2x256xf32>
      %c22 = arith.constant 22 : index
      %c0_37 = arith.constant 0 : index
      %76 = vector.load %arg3[%c22, %c0_37] : memref<98x256xf32, #tpu.memory_space<vmem>>, vector<2x256xf32>
      %77 = arith.mulf %75, %76 : vector<2x256xf32>
      %78 = arith.addf %62, %77 : vector<2x256xf32>
      %c30_i32 = arith.constant 30 : i32
      %79 = tpu.dynamic_rotate %26 by %c30_i32 dim 1 : vector<2x256xf32>, i32 -> vector<2x256xf32>
      %c24 = arith.constant 24 : index
      %c0_38 = arith.constant 0 : index
      %80 = vector.load %arg3[%c24, %c0_38] : memref<98x256xf32, #tpu.memory_space<vmem>>, vector<2x256xf32>
      %81 = arith.mulf %79, %80 : vector<2x256xf32>
      %82 = arith.addf %66, %81 : vector<2x256xf32>
      %c29_i32 = arith.constant 29 : i32
      %83 = tpu.dynamic_rotate %26 by %c29_i32 dim 1 : vector<2x256xf32>, i32 -> vector<2x256xf32>
      %c26 = arith.constant 26 : index
      %c0_39 = arith.constant 0 : index
      %84 = vector.load %arg3[%c26, %c0_39] : memref<98x256xf32, #tpu.memory_space<vmem>>, vector<2x256xf32>
      %85 = arith.mulf %83, %84 : vector<2x256xf32>
      %86 = arith.addf %70, %85 : vector<2x256xf32>
      %c19_i32 = arith.constant 19 : i32
      %87 = tpu.dynamic_rotate %26 by %c19_i32 dim 1 : vector<2x256xf32>, i32 -> vector<2x256xf32>
      %c28 = arith.constant 28 : index
      %c0_40 = arith.constant 0 : index
      %88 = vector.load %arg3[%c28, %c0_40] : memref<98x256xf32, #tpu.memory_space<vmem>>, vector<2x256xf32>
      %89 = arith.mulf %87, %88 : vector<2x256xf32>
      %90 = arith.addf %74, %89 : vector<2x256xf32>
      %c18_i32 = arith.constant 18 : i32
      %91 = tpu.dynamic_rotate %26 by %c18_i32 dim 1 : vector<2x256xf32>, i32 -> vector<2x256xf32>
      %c30 = arith.constant 30 : index
      %c0_41 = arith.constant 0 : index
      %92 = vector.load %arg3[%c30, %c0_41] : memref<98x256xf32, #tpu.memory_space<vmem>>, vector<2x256xf32>
      %93 = arith.mulf %91, %92 : vector<2x256xf32>
      %94 = arith.addf %78, %93 : vector<2x256xf32>
      %c17_i32 = arith.constant 17 : i32
      %95 = tpu.dynamic_rotate %26 by %c17_i32 dim 1 : vector<2x256xf32>, i32 -> vector<2x256xf32>
      %c32 = arith.constant 32 : index
      %c0_42 = arith.constant 0 : index
      %96 = vector.load %arg3[%c32, %c0_42] : memref<98x256xf32, #tpu.memory_space<vmem>>, vector<2x256xf32>
      %97 = arith.mulf %95, %96 : vector<2x256xf32>
      %98 = arith.addf %82, %97 : vector<2x256xf32>
      %c16_i32 = arith.constant 16 : i32
      %99 = tpu.dynamic_rotate %26 by %c16_i32 dim 1 : vector<2x256xf32>, i32 -> vector<2x256xf32>
      %c34 = arith.constant 34 : index
      %c0_43 = arith.constant 0 : index
      %100 = vector.load %arg3[%c34, %c0_43] : memref<98x256xf32, #tpu.memory_space<vmem>>, vector<2x256xf32>
      %101 = arith.mulf %99, %100 : vector<2x256xf32>
      %102 = arith.addf %86, %101 : vector<2x256xf32>
      %c15_i32 = arith.constant 15 : i32
      %103 = tpu.dynamic_rotate %26 by %c15_i32 dim 1 : vector<2x256xf32>, i32 -> vector<2x256xf32>
      %c36 = arith.constant 36 : index
      %c0_44 = arith.constant 0 : index
      %104 = vector.load %arg3[%c36, %c0_44] : memref<98x256xf32, #tpu.memory_space<vmem>>, vector<2x256xf32>
      %105 = arith.mulf %103, %104 : vector<2x256xf32>
      %106 = arith.addf %90, %105 : vector<2x256xf32>
      %c14_i32 = arith.constant 14 : i32
      %107 = tpu.dynamic_rotate %26 by %c14_i32 dim 1 : vector<2x256xf32>, i32 -> vector<2x256xf32>
      %c38 = arith.constant 38 : index
      %c0_45 = arith.constant 0 : index
      %108 = vector.load %arg3[%c38, %c0_45] : memref<98x256xf32, #tpu.memory_space<vmem>>, vector<2x256xf32>
      %109 = arith.mulf %107, %108 : vector<2x256xf32>
      %110 = arith.addf %94, %109 : vector<2x256xf32>
      %c13_i32 = arith.constant 13 : i32
      %111 = tpu.dynamic_rotate %26 by %c13_i32 dim 1 : vector<2x256xf32>, i32 -> vector<2x256xf32>
      %c40 = arith.constant 40 : index
      %c0_46 = arith.constant 0 : index
      %112 = vector.load %arg3[%c40, %c0_46] : memref<98x256xf32, #tpu.memory_space<vmem>>, vector<2x256xf32>
      %113 = arith.mulf %111, %112 : vector<2x256xf32>
      %114 = arith.addf %98, %113 : vector<2x256xf32>
      %c3_i32 = arith.constant 3 : i32
      %115 = tpu.dynamic_rotate %26 by %c3_i32 dim 1 : vector<2x256xf32>, i32 -> vector<2x256xf32>
      %c42 = arith.constant 42 : index
      %c0_47 = arith.constant 0 : index
      %116 = vector.load %arg3[%c42, %c0_47] : memref<98x256xf32, #tpu.memory_space<vmem>>, vector<2x256xf32>
      %117 = arith.mulf %115, %116 : vector<2x256xf32>
      %118 = arith.addf %102, %117 : vector<2x256xf32>
      %c2_i32 = arith.constant 2 : i32
      %119 = tpu.dynamic_rotate %26 by %c2_i32 dim 1 : vector<2x256xf32>, i32 -> vector<2x256xf32>
      %c44 = arith.constant 44 : index
      %c0_48 = arith.constant 0 : index
      %120 = vector.load %arg3[%c44, %c0_48] : memref<98x256xf32, #tpu.memory_space<vmem>>, vector<2x256xf32>
      %121 = arith.mulf %119, %120 : vector<2x256xf32>
      %122 = arith.addf %106, %121 : vector<2x256xf32>
      %c1_i32 = arith.constant 1 : i32
      %123 = tpu.dynamic_rotate %26 by %c1_i32 dim 1 : vector<2x256xf32>, i32 -> vector<2x256xf32>
      %c46 = arith.constant 46 : index
      %c0_49 = arith.constant 0 : index
      %124 = vector.load %arg3[%c46, %c0_49] : memref<98x256xf32, #tpu.memory_space<vmem>>, vector<2x256xf32>
      %125 = arith.mulf %123, %124 : vector<2x256xf32>
      %126 = arith.addf %110, %125 : vector<2x256xf32>
      %c48 = arith.constant 48 : index
      %c0_50 = arith.constant 0 : index
      %127 = vector.load %arg3[%c48, %c0_50] : memref<98x256xf32, #tpu.memory_space<vmem>>, vector<2x256xf32>
      %128 = arith.mulf %26, %127 : vector<2x256xf32>
      %129 = arith.addf %114, %128 : vector<2x256xf32>
      %c255_i32 = arith.constant 255 : i32
      %130 = tpu.dynamic_rotate %26 by %c255_i32 dim 1 : vector<2x256xf32>, i32 -> vector<2x256xf32>
      %c50 = arith.constant 50 : index
      %c0_51 = arith.constant 0 : index
      %131 = vector.load %arg3[%c50, %c0_51] : memref<98x256xf32, #tpu.memory_space<vmem>>, vector<2x256xf32>
      %132 = arith.mulf %130, %131 : vector<2x256xf32>
      %133 = arith.addf %118, %132 : vector<2x256xf32>
      %c254_i32 = arith.constant 254 : i32
      %134 = tpu.dynamic_rotate %26 by %c254_i32 dim 1 : vector<2x256xf32>, i32 -> vector<2x256xf32>
      %c52 = arith.constant 52 : index
      %c0_52 = arith.constant 0 : index
      %135 = vector.load %arg3[%c52, %c0_52] : memref<98x256xf32, #tpu.memory_space<vmem>>, vector<2x256xf32>
      %136 = arith.mulf %134, %135 : vector<2x256xf32>
      %137 = arith.addf %122, %136 : vector<2x256xf32>
      %c253_i32 = arith.constant 253 : i32
      %138 = tpu.dynamic_rotate %26 by %c253_i32 dim 1 : vector<2x256xf32>, i32 -> vector<2x256xf32>
      %c54 = arith.constant 54 : index
      %c0_53 = arith.constant 0 : index
      %139 = vector.load %arg3[%c54, %c0_53] : memref<98x256xf32, #tpu.memory_space<vmem>>, vector<2x256xf32>
      %140 = arith.mulf %138, %139 : vector<2x256xf32>
      %141 = arith.addf %126, %140 : vector<2x256xf32>
      %c243_i32 = arith.constant 243 : i32
      %142 = tpu.dynamic_rotate %26 by %c243_i32 dim 1 : vector<2x256xf32>, i32 -> vector<2x256xf32>
      %c56 = arith.constant 56 : index
      %c0_54 = arith.constant 0 : index
      %143 = vector.load %arg3[%c56, %c0_54] : memref<98x256xf32, #tpu.memory_space<vmem>>, vector<2x256xf32>
      %144 = arith.mulf %142, %143 : vector<2x256xf32>
      %145 = arith.addf %129, %144 : vector<2x256xf32>
      %c242_i32 = arith.constant 242 : i32
      %146 = tpu.dynamic_rotate %26 by %c242_i32 dim 1 : vector<2x256xf32>, i32 -> vector<2x256xf32>
      %c58 = arith.constant 58 : index
      %c0_55 = arith.constant 0 : index
      %147 = vector.load %arg3[%c58, %c0_55] : memref<98x256xf32, #tpu.memory_space<vmem>>, vector<2x256xf32>
      %148 = arith.mulf %146, %147 : vector<2x256xf32>
      %149 = arith.addf %133, %148 : vector<2x256xf32>
      %c241_i32 = arith.constant 241 : i32
      %150 = tpu.dynamic_rotate %26 by %c241_i32 dim 1 : vector<2x256xf32>, i32 -> vector<2x256xf32>
      %c60 = arith.constant 60 : index
      %c0_56 = arith.constant 0 : index
      %151 = vector.load %arg3[%c60, %c0_56] : memref<98x256xf32, #tpu.memory_space<vmem>>, vector<2x256xf32>
      %152 = arith.mulf %150, %151 : vector<2x256xf32>
      %153 = arith.addf %137, %152 : vector<2x256xf32>
      %c240_i32 = arith.constant 240 : i32
      %154 = tpu.dynamic_rotate %26 by %c240_i32 dim 1 : vector<2x256xf32>, i32 -> vector<2x256xf32>
      %c62 = arith.constant 62 : index
      %c0_57 = arith.constant 0 : index
      %155 = vector.load %arg3[%c62, %c0_57] : memref<98x256xf32, #tpu.memory_space<vmem>>, vector<2x256xf32>
      %156 = arith.mulf %154, %155 : vector<2x256xf32>
      %157 = arith.addf %141, %156 : vector<2x256xf32>
      %c239_i32 = arith.constant 239 : i32
      %158 = tpu.dynamic_rotate %26 by %c239_i32 dim 1 : vector<2x256xf32>, i32 -> vector<2x256xf32>
      %c64 = arith.constant 64 : index
      %c0_58 = arith.constant 0 : index
      %159 = vector.load %arg3[%c64, %c0_58] : memref<98x256xf32, #tpu.memory_space<vmem>>, vector<2x256xf32>
      %160 = arith.mulf %158, %159 : vector<2x256xf32>
      %161 = arith.addf %145, %160 : vector<2x256xf32>
      %c238_i32 = arith.constant 238 : i32
      %162 = tpu.dynamic_rotate %26 by %c238_i32 dim 1 : vector<2x256xf32>, i32 -> vector<2x256xf32>
      %c66 = arith.constant 66 : index
      %c0_59 = arith.constant 0 : index
      %163 = vector.load %arg3[%c66, %c0_59] : memref<98x256xf32, #tpu.memory_space<vmem>>, vector<2x256xf32>
      %164 = arith.mulf %162, %163 : vector<2x256xf32>
      %165 = arith.addf %149, %164 : vector<2x256xf32>
      %c237_i32 = arith.constant 237 : i32
      %166 = tpu.dynamic_rotate %26 by %c237_i32 dim 1 : vector<2x256xf32>, i32 -> vector<2x256xf32>
      %c68 = arith.constant 68 : index
      %c0_60 = arith.constant 0 : index
      %167 = vector.load %arg3[%c68, %c0_60] : memref<98x256xf32, #tpu.memory_space<vmem>>, vector<2x256xf32>
      %168 = arith.mulf %166, %167 : vector<2x256xf32>
      %169 = arith.addf %153, %168 : vector<2x256xf32>
      %c227_i32 = arith.constant 227 : i32
      %170 = tpu.dynamic_rotate %26 by %c227_i32 dim 1 : vector<2x256xf32>, i32 -> vector<2x256xf32>
      %c70 = arith.constant 70 : index
      %c0_61 = arith.constant 0 : index
      %171 = vector.load %arg3[%c70, %c0_61] : memref<98x256xf32, #tpu.memory_space<vmem>>, vector<2x256xf32>
      %172 = arith.mulf %170, %171 : vector<2x256xf32>
      %173 = arith.addf %157, %172 : vector<2x256xf32>
      %c226_i32 = arith.constant 226 : i32
      %174 = tpu.dynamic_rotate %26 by %c226_i32 dim 1 : vector<2x256xf32>, i32 -> vector<2x256xf32>
      %c72 = arith.constant 72 : index
      %c0_62 = arith.constant 0 : index
      %175 = vector.load %arg3[%c72, %c0_62] : memref<98x256xf32, #tpu.memory_space<vmem>>, vector<2x256xf32>
      %176 = arith.mulf %174, %175 : vector<2x256xf32>
      %177 = arith.addf %161, %176 : vector<2x256xf32>
      %c225_i32 = arith.constant 225 : i32
      %178 = tpu.dynamic_rotate %26 by %c225_i32 dim 1 : vector<2x256xf32>, i32 -> vector<2x256xf32>
      %c74 = arith.constant 74 : index
      %c0_63 = arith.constant 0 : index
      %179 = vector.load %arg3[%c74, %c0_63] : memref<98x256xf32, #tpu.memory_space<vmem>>, vector<2x256xf32>
      %180 = arith.mulf %178, %179 : vector<2x256xf32>
      %181 = arith.addf %165, %180 : vector<2x256xf32>
      %c224_i32 = arith.constant 224 : i32
      %182 = tpu.dynamic_rotate %26 by %c224_i32 dim 1 : vector<2x256xf32>, i32 -> vector<2x256xf32>
      %c76 = arith.constant 76 : index
      %c0_64 = arith.constant 0 : index
      %183 = vector.load %arg3[%c76, %c0_64] : memref<98x256xf32, #tpu.memory_space<vmem>>, vector<2x256xf32>
      %184 = arith.mulf %182, %183 : vector<2x256xf32>
      %185 = arith.addf %169, %184 : vector<2x256xf32>
      %c223_i32 = arith.constant 223 : i32
      %186 = tpu.dynamic_rotate %26 by %c223_i32 dim 1 : vector<2x256xf32>, i32 -> vector<2x256xf32>
      %c78 = arith.constant 78 : index
      %c0_65 = arith.constant 0 : index
      %187 = vector.load %arg3[%c78, %c0_65] : memref<98x256xf32, #tpu.memory_space<vmem>>, vector<2x256xf32>
      %188 = arith.mulf %186, %187 : vector<2x256xf32>
      %189 = arith.addf %173, %188 : vector<2x256xf32>
      %c222_i32 = arith.constant 222 : i32
      %190 = tpu.dynamic_rotate %26 by %c222_i32 dim 1 : vector<2x256xf32>, i32 -> vector<2x256xf32>
      %c80 = arith.constant 80 : index
      %c0_66 = arith.constant 0 : index
      %191 = vector.load %arg3[%c80, %c0_66] : memref<98x256xf32, #tpu.memory_space<vmem>>, vector<2x256xf32>
      %192 = arith.mulf %190, %191 : vector<2x256xf32>
      %193 = arith.addf %177, %192 : vector<2x256xf32>
      %c221_i32 = arith.constant 221 : i32
      %194 = tpu.dynamic_rotate %26 by %c221_i32 dim 1 : vector<2x256xf32>, i32 -> vector<2x256xf32>
      %c82 = arith.constant 82 : index
      %c0_67 = arith.constant 0 : index
      %195 = vector.load %arg3[%c82, %c0_67] : memref<98x256xf32, #tpu.memory_space<vmem>>, vector<2x256xf32>
      %196 = arith.mulf %194, %195 : vector<2x256xf32>
      %197 = arith.addf %181, %196 : vector<2x256xf32>
      %c211_i32 = arith.constant 211 : i32
      %198 = tpu.dynamic_rotate %26 by %c211_i32 dim 1 : vector<2x256xf32>, i32 -> vector<2x256xf32>
      %c84 = arith.constant 84 : index
      %c0_68 = arith.constant 0 : index
      %199 = vector.load %arg3[%c84, %c0_68] : memref<98x256xf32, #tpu.memory_space<vmem>>, vector<2x256xf32>
      %200 = arith.mulf %198, %199 : vector<2x256xf32>
      %201 = arith.addf %185, %200 : vector<2x256xf32>
      %c210_i32 = arith.constant 210 : i32
      %202 = tpu.dynamic_rotate %26 by %c210_i32 dim 1 : vector<2x256xf32>, i32 -> vector<2x256xf32>
      %c86 = arith.constant 86 : index
      %c0_69 = arith.constant 0 : index
      %203 = vector.load %arg3[%c86, %c0_69] : memref<98x256xf32, #tpu.memory_space<vmem>>, vector<2x256xf32>
      %204 = arith.mulf %202, %203 : vector<2x256xf32>
      %205 = arith.addf %189, %204 : vector<2x256xf32>
      %c209_i32 = arith.constant 209 : i32
      %206 = tpu.dynamic_rotate %26 by %c209_i32 dim 1 : vector<2x256xf32>, i32 -> vector<2x256xf32>
      %c88 = arith.constant 88 : index
      %c0_70 = arith.constant 0 : index
      %207 = vector.load %arg3[%c88, %c0_70] : memref<98x256xf32, #tpu.memory_space<vmem>>, vector<2x256xf32>
      %208 = arith.mulf %206, %207 : vector<2x256xf32>
      %209 = arith.addf %193, %208 : vector<2x256xf32>
      %c208_i32 = arith.constant 208 : i32
      %210 = tpu.dynamic_rotate %26 by %c208_i32 dim 1 : vector<2x256xf32>, i32 -> vector<2x256xf32>
      %c90 = arith.constant 90 : index
      %c0_71 = arith.constant 0 : index
      %211 = vector.load %arg3[%c90, %c0_71] : memref<98x256xf32, #tpu.memory_space<vmem>>, vector<2x256xf32>
      %212 = arith.mulf %210, %211 : vector<2x256xf32>
      %213 = arith.addf %197, %212 : vector<2x256xf32>
      %c207_i32 = arith.constant 207 : i32
      %214 = tpu.dynamic_rotate %26 by %c207_i32 dim 1 : vector<2x256xf32>, i32 -> vector<2x256xf32>
      %c92 = arith.constant 92 : index
      %c0_72 = arith.constant 0 : index
      %215 = vector.load %arg3[%c92, %c0_72] : memref<98x256xf32, #tpu.memory_space<vmem>>, vector<2x256xf32>
      %216 = arith.mulf %214, %215 : vector<2x256xf32>
      %217 = arith.addf %201, %216 : vector<2x256xf32>
      %c206_i32 = arith.constant 206 : i32
      %218 = tpu.dynamic_rotate %26 by %c206_i32 dim 1 : vector<2x256xf32>, i32 -> vector<2x256xf32>
      %c94 = arith.constant 94 : index
      %c0_73 = arith.constant 0 : index
      %219 = vector.load %arg3[%c94, %c0_73] : memref<98x256xf32, #tpu.memory_space<vmem>>, vector<2x256xf32>
      %220 = arith.mulf %218, %219 : vector<2x256xf32>
      %221 = arith.addf %205, %220 : vector<2x256xf32>
      %c205_i32 = arith.constant 205 : i32
      %222 = tpu.dynamic_rotate %26 by %c205_i32 dim 1 : vector<2x256xf32>, i32 -> vector<2x256xf32>
      %c96 = arith.constant 96 : index
      %c0_74 = arith.constant 0 : index
      %223 = vector.load %arg3[%c96, %c0_74] : memref<98x256xf32, #tpu.memory_space<vmem>>, vector<2x256xf32>
      %224 = arith.mulf %222, %223 : vector<2x256xf32>
      %225 = arith.addf %209, %224 : vector<2x256xf32>
      %226 = arith.addf %225, %213 : vector<2x256xf32>
      %227 = arith.addf %226, %217 : vector<2x256xf32>
      %228 = arith.addf %227, %221 : vector<2x256xf32>
      %229 = vector.extract_strided_slice %228 {offsets = [0, 0], sizes = [1, 256], strides = [1, 1]} : vector<2x256xf32> to vector<1x256xf32>
      %230 = vector.extract_strided_slice %228 {offsets = [1, 0], sizes = [1, 256], strides = [1, 1]} : vector<2x256xf32> to vector<1x256xf32>
      %231 = arith.addf %229, %230 : vector<1x256xf32>
      %232 = arith.negf %231 : vector<1x256xf32>
      %233 = math.exp %232 : vector<1x256xf32>
      %cst_75 = arith.constant 1.000000e+00 : f32
      %234 = vector.broadcast %cst_75 : f32 to vector<1x256xf32>
      %235 = arith.addf %234, %233 : vector<1x256xf32>
      %236 = arith.divf %234, %235 : vector<1x256xf32>
      %c0_76 = arith.constant 0 : index
      %c0_77 = arith.constant 0 : index
      %c0_78 = arith.constant 0 : index
      %237 = vector.load %arg4[%c0_76, %c0_77, %c0_78] : memref<1x1x256xf32, #tpu.memory_space<vmem>>, vector<1x1x256xf32>
      %238 = vector.shape_cast %237 : vector<1x1x256xf32> to vector<1x256xf32>
      %239 = vector.shape_cast %236 : vector<1x256xf32> to vector<1x1x256xf32>
      tpu.vector_store %arg4[%c0_76, %c0_77, %c0_78], %239 {strides = array<i32>} : memref<1x1x256xf32, #tpu.memory_space<vmem>>, vector<1x1x256xf32>,
    } else {
    }
    return
  }
  func.func @transform_0(%arg0: i32, %arg1: i32) -> (i32, i32, i32) {
    %c0_i32 = arith.constant 0 : i32
    %c0_i32_0 = arith.constant 0 : i32
    return %arg0, %arg1, %c0_i32 : i32, i32, i32
  }
  func.func @transform_1(%arg0: i32, %arg1: i32) -> (i32, i32) {
    %c0_i32 = arith.constant 0 : i32
    %c0_i32_0 = arith.constant 0 : i32
    %c0_i32_1 = arith.constant 0 : i32
    return %c0_i32, %c0_i32_0 : i32, i32
  }
  func.func @transform_2(%arg0: i32, %arg1: i32) -> (i32, i32, i32) {
    %c0_i32 = arith.constant 0 : i32
    %c0_i32_0 = arith.constant 0 : i32
    %c0_i32_1 = arith.constant 0 : i32
    return %arg0, %c0_i32, %c0_i32_0 : i32, i32, i32
  }
}

</mosaic_0001>

<bundles_post_ra>
// kernel: tpu_custom_call.1
= control target key start
LH: loop header
LB: loop body
LE: loop exit
PB: predicated region body
PF: predicated region fallthrough
CT: control target
= control target key end

     0   :  { %7 = vsyncpa [#allocation5], 0  ;;  %s2174_s0 = inlined_call_operand.hbm [shape: f32[2,4,256], index: 0, kind: input, shape index: {}]   ;;  %s2175_s1 = inlined_call_operand.hbm [shape: f32[98,256], index: 1, kind: input, shape index: {}]   ;;  %s2176_s2 = inlined_call_operand.hbm [shape: f32[2,1,256], index: 2, kind: output, shape index: {}]  }
   0x1   :  { %9 = vsyncpa [#allocation5 + $0x1], 0 }
   0x2   :  { %10 = vsyncpa [#allocation8], 0 }
   0x3   :  { %11 = vsyncpa [#allocation6], 0 }
   0x4   :  { %13 = vsyncpa [#allocation6 + $0x1], 0  ;;  %s1683_s9 = smov 0   ;;  %s1685_s10 = smov 0  }
   0x5   :  { %s1687_s11 = smov 0   ;;  %s1689_s12 = smov 0  }
   0x6   :  { %s1691_s13 = smov 0   ;;  %s1693_s14 = smov 0  }
   0x7 LB: > { %s1315_s15 = sadd.s32 4294967295, %s1613_s14   ;;  %p1317_p0 = scmp.ge.s32.totalorder %s1613_s14, 1  ;;  %s1613_s14 = sphi %s1693_s14, %s19_s14   ;;  %s1609_s13 = sphi %s1691_s13, %s2191_s13   ;;  %s1605_s12 = sphi %s1689_s12, %s2190_s12   ;;  %s1601_s11 = sphi %s1687_s11, %s2189_s11   ;;  %s1597_s10 = sphi %s1685_s10, %s2188_s10   ;;  %s1593_s9 = sphi %s1683_s9, %s2187_s9  }
   0x8   : > { %p1715_p1 = scmp.eq.s32.totalorder %s1315_s15, 0  ;;  %p111_p2 = scmp.lt.s32.totalorder %s1613_s14, 3 }
   0x9   : > { %s122_s19 = sshll.u32 %s2175_s1, 4  ;;  %s1615_s21 = smov [#allocation7]   ;;  %s123_s19 = int_to_ptr.hbm [resolvable:$true] %s122_s19 }
   0xa   : > { %p1723_p3 = pnand %p1317_p0, %p111_p2  ;;  %s124_s22 = sshll.u32 %s1615_s21, 4  ;;  %s125_s22 = int_to_ptr.vmem [resolvable:$true] %s124_s22 }
   0xb   : > { %p1319_p6 = scmp.ge.s32.totalorder %s1613_s14, 2  ;;  %s1616_s23 = smov 256  }
   0xc   : > { %p1342_p4 = pneg %p1723_p3  ;;  %s1617_s24 = smov 16  }
   0xd   : > { %s1316_s25 = sadd.s32 4294967294, %s1613_s14   ;;  %s31_s26 = sadd.s32 1, %s1609_s13 }
   0xe   : > { %p1343_p5 = pnand %p1342_p4, %p1715_p1  ;;  %s40_s27 = sadd.s32 1, %s1601_s11 }
   0xf   : > { %p33_p7 = scmp.ge.s32.totalorder %s31_s26, 2  ;;  %p47_p8 = scmp.ne.s32.totalorder %s1601_s11, %s1597_s10 }
  0x10   : > { %1345 = dma.hbm_to_vmem [thread:$0]  (!%p1343_p5), %s123_s19, 3328, %s125_s22, [#allocation8], %s1616_s23, %s1616_s23, %s1617_s24  }
  0x11   : > { %p48_p9 = scmp.eq.s32.totalorder %s1613_s14, 0  ;;  %p53_p10 = scmp.ne.s32.totalorder %s1597_s10, %s1593_s9 }
  0x12   : > { %s2193_s26 = smov (%p33_p7, %s31_s26), 0  ;;  %p98_p13 = scmp.eq.s32.totalorder %s1315_s15, 1 }
  0x13   : > { %p1742_p11 = por %p48_p9, %p47_p8  ;;  %p1748_p12 = por %p1715_p1, %p53_p10 }
  0x14   : > { %s35_s30 = ssub.s32 %s1609_s13, %s2193_s26  ;;  %p104_p2 = scmp.eq.s32.totalorder %s1316_s25, 1 }
  0x15   : > { %p38_p0 = scmp.eq.s32.totalorder %s35_s30, 0  ;;  %p1754_p4 = por %p98_p13, %p47_p8 }
  0x16   : > { %p1355_p5 = scmp.lt.s32.totalorder %s1613_s14, 2  ;;  %p1762_p7 = por %p104_p2, %p53_p10 }
  0x17   : > { %s1760_s4 = scalar_select %p38_p0, %s1601_s11, %s40_s27  }
  0x18   : > { %s138_s6 = sand.u32 1, %s1601_s11   ;;  %s1333_s8 = sshll.u32 %s1609_s13, 3 }
  0x19   : > { %s1320_s7 = sshll.u32 %s138_s6, 3  ;;  %s149_s15 = scalar_lea.hbm %s2174_s0, %s1333_s8 }
  0x1a   : > { %s142_s19 = scalar_lea.vmem [#allocation4], %s1320_s7  ;;  %s151_s22 = sshll.u32 %s149_s15, 4  ;;  %s152_s22 = int_to_ptr.hbm [resolvable:$true] %s151_s22 }
  0x1b   : > { %s153_s21 = sshll.u32 %s142_s19, 4  ;;  %p1347_p8 = pnand %p1355_p5, %p1742_p11  ;;  %s154_s21 = int_to_ptr.vmem [resolvable:$true] %s153_s21 }
  0x1c   : > { %s139_s23 = scalar_lea.sflag [#allocation5], %s138_s6  ;;  %162 = sbr.rel (%p1723_p3) target bundleno = 507 (0x1fb), region = 28 }
  0x1d   : > { %1349 = dma.hbm_to_vmem [thread:$0]  (!%p1347_p8), %s152_s22, 128, %s154_s21, %s139_s23  }
  0x1e   : > { %s1776_s24 = sand.u32 (!%p1723_p3), 1, %s1597_s10  }
  0x1f   : > { %s1324_s25 = sshll.u32 (!%p1723_p3), %s1776_s24, 3  ;;  %s165_s27 = scalar_lea.sflag (!%p1723_p3), [#allocation5], %s1776_s24 }
  0x20   : > { %s168_s30 = scalar_lea.vmem (!%p1723_p3), [#allocation4], %s1324_s25 }
  0x21   : > { %1580 = dma.done.wait (%p1748_p12), %s165_s27, 128  }
  0x22   : > { %1582 = vsyncadd (%p1748_p12), %s165_s27, 4294967168 }
  0x23   : > { %1584 = dma.done.wait (%p1715_p1), [#allocation8], 3328  }
  0x24   : > { %1586 = vsyncadd (%p1715_p1), [#allocation8], 4294963968  ;;  %v1618_v0 = vmov 0.0   ;;  %v1619_v1 = vmov -inf   ;;  %v203_v2 = vld [vmem:[%s168_s30] sm:$0xff]  ;;  %vm211_vm0 = vcmask 1043456   ;;  %v233_v23 = vlaneseq }
  0x25   : > { %199 = vst [vmem:[#allocation2] sm:$0xff] %v1618_v0  ;;  %vm229_vm1 = vcmask 1040384   ;;  %s1620_s16 = smov 50   ;;  %s1621_s20 = smov 51  }
  0x26   : > { %200 = vst [vmem:[#allocation2 + $0x8] sm:$0xff] %v1618_v0  ;;  %vm1794_vm2 = vcmp.lt.s32.totalorder %v233_v23, 256  ;;  %s1622_s28 = smov 49   ;;  %s1623_s29 = smov 48  }
  0x27   : > { %201 = vst [vmem:[#allocation3] sm:$0xff] %v1619_v1  ;;  %s1624_s6 = smov 47   ;;  %s1625_s7 = smov 46  }
  0x28   : > { %202 = vst [vmem:[#allocation3 + $0x8] sm:$0xff] %v1619_v1  ;;  %s1626_s8 = smov 45   ;;  %s1627_s17 = smov 35  }
  0x29   : > { %206 = vst [vmem:[#allocation1] ss:$2 sm:$0xff] %v203_v2  ;;  %s1628_s18 = smov 34   ;;  %s1629_s15 = smov 33  }
  0x2a   : > { %s1630_s19 = smov 32   ;;  %s1631_s21 = smov 31  }
  0x2b   : > { %s1632_s22 = smov 30   ;;  %s1633_s23 = smov 29  }
  0x2c   : > { %s1634_s25 = smov 19   ;;  %s1635_s27 = smov 18  }
  0x2d   : > { %v204_v28 = vld [vmem:[#allocation2] ss:$8 sm:$0x3]  ;;  %s1636_s30 = smov 17  }
  0x2f   : > { %v239_v41 = vld [vmem:[#allocation3] ss:$8 sm:$0x3] }
  0x30   : > { %v207_v3 = vld.sshfl [vmem:[#allocation1] sm:$0xff pattern:$0x75316420]  ;;  %v208_v4 = vld.sshfl [vmem:[#allocation1 + $0x8] sm:$0xff pattern:$0x75316420] }
  0x31   : > { %v212_v5 = vsel %vm211_vm0, %v207_v3, 0.0  ;;  %v219_v6 = vsel %vm211_vm0, %v208_v4, 0.0  ;;  %240 = vst [vmem:[#allocation1] ss:$2 sm:$0xff] %v203_v2 }
  0x32   : > { %v213_v7 = vrot.slane %v212_v5, 4  ;;  %v220_v8 = vrot.slane %v219_v6, 4 }
  0x34   : > { %v214_v9 = vadd.f32 %v213_v7, %v212_v5  ;;  %v221_v10 = vadd.f32 %v220_v8, %v219_v6 }
  0x36   : > { %v215_v11 = vrot.slane %v214_v9, 2  ;;  %v222_v12 = vrot.slane %v221_v10, 2 }
  0x38   : > { %v216_v13 = vadd.f32 %v215_v11, %v214_v9  ;;  %v223_v14 = vadd.f32 %v222_v12, %v221_v10  ;;  %v241_v15 = vld.sshfl [vmem:[#allocation1] sm:$0xff pattern:$0x75316420]  ;;  %v242_v16 = vld.sshfl [vmem:[#allocation1 + $0x8] sm:$0xff pattern:$0x75316420] }
  0x39   : > { %v245_v17 = vsel %vm211_vm0, %v241_v15, -inf  ;;  %v252_v18 = vsel %vm211_vm0, %v242_v16, -inf }
  0x3a   : > { %v217_v19 = vrot.slane %v216_v13, 1  ;;  %v224_v20 = vrot.slane %v223_v14, 1  ;;  %v246_v21 = vrot.slane %v245_v17, 4  ;;  %v253_v22 = vrot.slane %v252_v18, 4 }
  0x3c   : > { %v218_v24 = vadd.f32 %v217_v19, %v216_v13  ;;  %v225_v25 = vadd.f32 %v224_v20, %v223_v14  ;;  %v247_v26 = vmax.f32 %v245_v17, %v246_v21  ;;  %v254_v27 = vmax.f32 %v252_v18, %v253_v22 }
  0x3d   : > { %v1846_v14 = vand.u32 127, %v233_v23 }
  0x3e   : > { %v228_v29 = vrot.slane %v225_v25, 7  ;;  %v248_v30 = vrot.slane %v247_v26, 2  ;;  %v255_v31 = vrot.slane %v254_v27, 2 }
  0x3f   : > { %vm340_vm3 = vcmp.lt.s32.totalorder %v1846_v14, 49  ;;  %vm321_vm4 = vcmp.lt.s32.totalorder %v1846_v14, 50  ;;  %vm308_vm5 = vcmp.lt.s32.totalorder %v1846_v14, 51  ;;  %vm359_vm6 = vcmp.lt.s32.totalorder %v1846_v14, 48 }
  0x40   : > { %v230_v32 = vsel %vm229_vm1, %v218_v24, %v228_v29  ;;  %v249_v34 = vmax.f32 %v247_v26, %v248_v30  ;;  %v256_v35 = vmax.f32 %v254_v27, %v255_v31  ;;  %v324_v31 = vld [vmem:[#allocation7] sm:$0xc]  ;;  %vm391_vm7 = vcmp.lt.s32.totalorder %v1846_v14, 46 }
  0x41   : > { %v232_v36 = vadd.f32 %v230_v32, %v204_v28  ;;  %v325_v32 = vld [vmem:[#allocation7 + $0x8] sm:$0xc]  ;;  %vm378_vm8 = vcmp.lt.s32.totalorder %v1846_v14, 47  ;;  %vm410_vm9 = vcmp.lt.s32.totalorder %v1846_v14, 45  ;;  %vm448_vm10 = vcmp.lt.s32.totalorder %v1846_v14, 34 }
  0x42   : > { %v250_v37 = vrot.slane %v249_v34, 1  ;;  %v257_v38 = vrot.slane %v256_v35, 1  ;;  %vm429_vm11 = vcmp.lt.s32.totalorder %v1846_v14, 35  ;;  %vm461_vm12 = vcmp.lt.s32.totalorder %v1846_v14, 33 }
  0x43   : > { %237 = vst.msk [vmem:[#allocation2] ss:$8 sm:$0x3] %vm1794_vm2, %v232_v36  ;;  %vm499_vm13 = vcmp.lt.s32.totalorder %v1846_v14, 31  ;;  %vm480_vm14 = vcmp.lt.s32.totalorder %v1846_v14, 32  ;;  %vm518_vm15 = vcmp.lt.s32.totalorder %v1846_v14, 30 }
  0x44   : > { %v251_v39 = vmax.f32 %v249_v34, %v250_v37  ;;  %v258_v40 = vmax.f32 %v256_v35, %v257_v38  ;;  %v394_v37 = vld [vmem:[#allocation7 + $0x10] sm:$0xc]  ;;  %v395_v38 = vld [vmem:[#allocation7 + $0x18] sm:$0xc]  ;;  %vm550_vm0 = vcmp.lt.s32.totalorder %v1846_v14, 19 }
  0x46   : > { %v261_v42 = vrot.slane %v258_v40, 7  ;;  %v329_v40 = vrot.slane %v325_v32, 2 }
  0x48   : > { %v262_v43 = vsel %vm229_vm1, %v251_v39, %v261_v42  ;;  %v328_v39 = vrot.slane %v324_v31, 2  ;;  %v312_v42 = vld [vmem:[#allocation7 + $0x8] sm:$0x3] }
  0x49   : > { %v264_v44 = vmax.f32 %v239_v41, %v262_v43  ;;  %v311_v41 = vld [vmem:[#allocation7] sm:$0x3]  ;;  %v398_v43 = vrot.slane %v394_v37, 2 }
  0x4a   : > { %v270_v45 = vld [vmem:[#allocation2] sm:$0xff]  ;;  %v271_v46 = vld [vmem:[#allocation2 + $0x8] sm:$0xff]  ;;  %v451_v37 = vld [vmem:[#allocation7 + $0x20] sm:$0x3] }
  0x4b   : > { %265 = vst.msk [vmem:[#allocation3] ss:$8 sm:$0x3] %vm1794_vm2, %v264_v44  ;;  %v272_v47 = vrot.slane %v270_v45, 4  ;;  %v278_v48 = vrot.slane %v271_v46, 4  ;;  %v399_v44 = vrot.slane %v395_v38, 2 }
  0x4c   : > { %v452_v38 = vld [vmem:[#allocation7 + $0x28] sm:$0x3] }
  0x4d   : > { %v273_v49 = vadd.f32 %v272_v47, %v270_v45  ;;  %v279_v50 = vadd.f32 %v278_v48, %v271_v46  ;;  %v381_v45 = vld [vmem:[#allocation7 + $0x10] sm:$0x3]  ;;  %v382_v46 = vld [vmem:[#allocation7 + $0x18] sm:$0x3] }
  0x4f   : > { %v274_v51 = vrot.slane %v273_v49, 2  ;;  %v280_v53 = vrot.slane %v279_v50, 2 }
  0x51   : > { %v275_v52 = vadd.f32 %v274_v51, %v273_v49  ;;  %v281_v60 = vadd.f32 %v280_v53, %v279_v50 }
  0x52   : > { %v286_v54 = vld [vmem:[#allocation3] sm:$0xff]  ;;  %v287_v55 = vld [vmem:[#allocation3 + $0x8] sm:$0xff] }
  0x53   : > { %v276_v56 = vrot.slane %v275_v52, 1  ;;  %v288_v57 = vrot.slane %v286_v54, 4  ;;  %v294_v58 = vrot.slane %v287_v55, 4  ;;  %v282_v2 = vrot.slane %v281_v60, 1 }
  0x55   : > { %v289_v59 = vmax.f32 %v286_v54, %v288_v57  ;;  %v295_v61 = vmax.f32 %v287_v55, %v294_v58  ;;  %v277_v62 = vadd.f32 %v276_v56, %v275_v52  ;;  %v283_v7 = vadd.f32 %v282_v2, %v281_v60  ;;  %v343_v58 = vld [vmem:[#allocation7] sm:$0x30] }
  0x57   : > { %v290_v63 = vrot.slane %v289_v59, 2  ;;  %v296_v0 = vrot.slane %v295_v61, 2  ;;  %v284_v4 = vmul.f32 0.25, %v277_v62  ;;  %v285_v10 = vmul.f32 0.25, %v283_v7 }
  0x59   : > { %v291_v1 = vmax.f32 %v289_v59, %v290_v63  ;;  %v297_v3 = vmax.f32 %v295_v61, %v296_v0  ;;  %v344_v63 = vld [vmem:[#allocation7 + $0x8] sm:$0x30]  ;;  %v413_v0 = vld [vmem:[#allocation7 + $0x10] sm:$0x30] }
  0x5a   : > { %v348_v7 = vrot.slane %v344_v63, 4 }
  0x5b   : > { %v292_v5 = vrot.slane %v291_v1, 1  ;;  %v298_v8 = vrot.slane %v297_v3, 1 }
  0x5d   : > { %v293_v6 = vmax.f32 %v291_v1, %v292_v5  ;;  %v299_v11 = vmax.f32 %v297_v3, %v298_v8  ;;  %v414_v1 = vld [vmem:[#allocation7 + $0x18] sm:$0x30]  ;;  %v417_v8 = vrot.slane %v413_v0, 4  ;;  %v502_v0 = vld [vmem:[#allocation7 + $0x20] sm:$0xc0] }
  0x5f   : > { %v1804_v9 = vsel %vm229_vm1, %v284_v4, %v293_v6  ;;  %v1810_v12 = vsel %vm229_vm1, %v285_v10, %v299_v11  ;;  %v347_v6 = vrot.slane %v343_v58, 4  ;;  %v418_v10 = vrot.slane %v414_v1, 4  ;;  %v503_v1 = vld [vmem:[#allocation7 + $0x28] sm:$0xc0] }
  0x60   : > { %317 = vrot.lane.b32.xlu1 %v1804_v9, %s1620_s16  ;;  %302 = vrot.lane.b32.xlu0 %v1804_v9, %s1621_s20 }
  0x61   : > { %336 = vrot.lane.b32.xlu2 %v1804_v9, %s1622_s28 }
  0x68   : > { %319 = vrot.lane.b32.xlu1 %v1810_v12, %s1620_s16  ;;  %304 = vrot.lane.b32.xlu0 %v1810_v12, %s1621_s20  ;;  %s1637_s16 = smov 16   ;;  %s1638_s20 = smov 15  }
  0x69   : > { %338 = vrot.lane.b32.xlu2 %v1810_v12, %s1622_s28  ;;  %s1639_s28 = smov 14  }
  0x70   : > { %357 = vrot.lane.b32.xlu1 %v1810_v12, %s1623_s29  ;;  %355 = vrot.lane.b32.xlu0 %v1804_v9, %s1623_s29  ;;  %s1640_s29 = smov 13  }
  0x71   : > { %374 = vrot.lane.b32.xlu2 %v1804_v9, %s1624_s6 }
  0x78   : > { %387 = vrot.lane.b32.xlu1 %v1804_v9, %s1625_s7  ;;  %376 = vrot.lane.b32.xlu0 %v1810_v12, %s1624_s6  ;;  %s1641_s6 = smov 3  }
  0x79   : > { %389 = vrot.lane.b32.xlu2 %v1810_v12, %s1625_s7  ;;  %s1642_s7 = smov 2  }
  0x80   : > { %408 = vrot.lane.b32.xlu1 %v1810_v12, %s1626_s8  ;;  %406 = vrot.lane.b32.xlu0 %v1804_v9, %s1626_s8  ;;  %s1643_s8 = smov 1  }
  0x81   : > { %425 = vrot.lane.b32.xlu2 %v1804_v9, %s1627_s17 }
  0x88   : > { %444 = vrot.lane.b32.xlu1 %v1804_v9, %s1628_s18  ;;  %427 = vrot.lane.b32.xlu0 %v1810_v12, %s1627_s17  ;;  %s1644_s17 = smov 127  }
  0x89   : > { %446 = vrot.lane.b32.xlu2 %v1810_v12, %s1628_s18  ;;  %s1645_s18 = smov 126  }
  0x90   : > { %459 = vrot.lane.b32.xlu1 %v1810_v12, %s1629_s15  ;;  %457 = vrot.lane.b32.xlu0 %v1804_v9, %s1629_s15  ;;  %s1646_s15 = smov 125  }
  0x91   : > { %476 = vrot.lane.b32.xlu2 %v1804_v9, %s1630_s19 }
  0x98   : > { %495 = vrot.lane.b32.xlu1 %v1804_v9, %s1631_s21  ;;  %478 = vrot.lane.b32.xlu0 %v1810_v12, %s1630_s19  ;;  %s1647_s19 = smov 115  }
  0x99   : > { %497 = vrot.lane.b32.xlu2 %v1810_v12, %s1631_s21  ;;  %s1648_s21 = smov 114  }
  0xa0   : > { %516 = vrot.lane.b32.xlu1 %v1810_v12, %s1632_s22  ;;  %514 = vrot.lane.b32.xlu0 %v1804_v9, %s1632_s22  ;;  %s1649_s22 = smov 113  }
  0xa1   : > { %527 = vrot.lane.b32.xlu2 %v1804_v9, %s1633_s23 }
  0xa8   : > { %546 = vrot.lane.b32.xlu1 %v1804_v9, %s1634_s25  ;;  %529 = vrot.lane.b32.xlu0 %v1810_v12, %s1633_s23  ;;  %s1650_s23 = smov 112  }
  0xa9   : > { %548 = vrot.lane.b32.xlu2 %v1810_v12, %s1634_s25  ;;  %s1651_s25 = smov 111  }
  0xb0   : > { %567 = vrot.lane.b32.xlu1 %v1810_v12, %s1635_s27  ;;  %565 = vrot.lane.b32.xlu0 %v1804_v9, %s1635_s27  ;;  %s1652_s27 = smov 110  }
  0xb1   : > { %584 = vrot.lane.b32.xlu2 %v1804_v9, %s1636_s30 }
  0xb8   : > { %597 = vrot.lane.b32.xlu1 %v1804_v9, %s1637_s16  ;;  %586 = vrot.lane.b32.xlu0 %v1810_v12, %s1636_s30  ;;  %s1653_s30 = smov 98  }
  0xb9   : > { %599 = vrot.lane.b32.xlu2 %v1810_v12, %s1637_s16  ;;  %s1654_s16 = smov 109  }
  0xbb   : > { %v337_v13 = vpop.permute.xlu2 %336 }
  0xc0   : > { %618 = vrot.lane.b32.xlu1 %v1810_v12, %s1638_s20  ;;  %616 = vrot.lane.b32.xlu0 %v1804_v9, %s1638_s20  ;;  %s1655_s20 = smov 97  }
  0xc1   : > { %635 = vrot.lane.b32.xlu2 %v1804_v9, %s1639_s28 }
  0xc3   : > { %v339_v15 = vpop.permute.xlu2 %338 }
  0xc4   : > { %v1852_v16 = vsel %vm340_vm3, %v337_v13, %v339_v15  ;;  %v1854_v17 = vsel %vm340_vm3, %v339_v15, %v337_v13  ;;  %v362_v15 = vld [vmem:[#allocation7] sm:$0xc0]  ;;  %vm531_vm3 = vcmp.lt.s32.totalorder %v1846_v14, 29 }
  0xc8   : > { %654 = vrot.lane.b32.xlu1 %v1804_v9, %s1640_s29  ;;  %637 = vrot.lane.b32.xlu0 %v1810_v12, %s1639_s28  ;;  %s1656_s28 = smov 94  }
  0xc9   : > { %656 = vrot.lane.b32.xlu2 %v1810_v12, %s1640_s29  ;;  %s1657_s29 = smov 99  }
  0xcb   : > { %v375_v18 = vpop.permute.xlu2 %374 }
  0xd0   : > { %669 = vrot.lane.b32.xlu1 %v1810_v12, %s1641_s6  ;;  %667 = vrot.lane.b32.xlu0 %v1804_v9, %s1641_s6  ;;  %s1658_s6 = smov 96  }
  0xd1   : > { %686 = vrot.lane.b32.xlu2 %v1804_v9, %s1642_s7 }
  0xd2   : > { %v318_v19 = vpop.permute.xlu1 %317  ;;  %v303_v20 = vpop.permute.xlu0 %302 }
  0xd3   : > { %v390_v21 = vpop.permute.xlu2 %389 }
  0xd8   : > { %705 = vrot.lane.b32.xlu1 %v1804_v9, %s1643_s8  ;;  %688 = vrot.lane.b32.xlu0 %v1810_v12, %s1642_s7  ;;  %s1659_s7 = smov 93  }
  0xd9   : > { %707 = vrot.lane.b32.xlu2 %v1810_v12, %s1643_s8  ;;  %s1660_s8 = smov 81  }
  0xda   : > { %v320_v22 = vpop.permute.xlu1 %319  ;;  %v305_v23 = vpop.permute.xlu0 %304 }
  0xdb   : > { %v322_v24 = vsel %vm321_vm4, %v318_v19, %v320_v22  ;;  %v323_v25 = vsel %vm321_vm4, %v320_v22, %v318_v19  ;;  %v309_v26 = vsel %vm308_vm5, %v303_v20, %v305_v23  ;;  %v310_v27 = vsel %vm308_vm5, %v305_v23, %v303_v20  ;;  %v1867_v28 = vpop.permute.xlu2 %425 }
  0xdc   : > { %v332_v47 = vmul.f32 %v328_v39, %v323_v25  ;;  %v333_v48 = vmul.f32 %v329_v40, %v322_v24  ;;  %v313_v49 = vmul.f32 %v311_v41, %v310_v27  ;;  %v314_v50 = vmul.f32 %v312_v42, %v309_v26  ;;  %v432_v26 = vld [vmem:[#allocation7 + $0x10] sm:$0xc0]  ;;  %v433_v27 = vld [vmem:[#allocation7 + $0x18] sm:$0xc0] }
  0xdd   : > { %v351_v22 = vmul.f32 %v347_v6, %v1854_v17  ;;  %v352_v23 = vmul.f32 %v348_v7, %v1852_v16  ;;  %v436_v16 = vrot.slane %v432_v26, 6  ;;  %v437_v17 = vrot.slane %v433_v27, 6 }
  0xde   : > { %vm569_vm4 = vcmp.lt.s32.totalorder %v1846_v14, 18  ;;  %vm601_vm5 = vcmp.lt.s32.totalorder %v1846_v14, 16 }
  0xe0   : > { %732 = vrot.lane.b32.xlu1 %v1810_v12, %s1644_s17  ;;  %730 = vrot.lane.b32.xlu0 %v1804_v9, %s1644_s17  ;;  %s1661_s17 = smov 95  }
  0xe1   : > { %749 = vrot.lane.b32.xlu2 %v1804_v9, %s1645_s18 }
  0xe2   : > { %v358_v29 = vpop.permute.xlu1 %357  ;;  %v356_v30 = vpop.permute.xlu0 %355 }
  0xe3   : > { %v1873_v34 = vsel %vm359_vm6, %v356_v30, %v358_v29  ;;  %v1875_v35 = vsel %vm359_vm6, %v358_v29, %v356_v30  ;;  %v1877_v36 = vpop.permute.xlu2 %446  ;;  %v366_v29 = vrot.slane %v362_v15, 6  ;;  %vm588_vm6 = vcmp.lt.s32.totalorder %v1846_v14, 17 }
  0xe5   : > { %v370_v39 = vmul.f32 %v366_v29, %v1875_v35  ;;  %v465_v35 = vld [vmem:[#allocation7 + $0x28] sm:$0xc] }
  0xe8   : > { %768 = vrot.lane.b32.xlu1 %v1804_v9, %s1646_s15  ;;  %751 = vrot.lane.b32.xlu0 %v1810_v12, %s1645_s18  ;;  %s1662_s18 = smov 83  }
  0xe9   : > { %770 = vrot.lane.b32.xlu2 %v1810_v12, %s1646_s15  ;;  %s1663_s15 = smov 80  }
  0xea   : > { %v388_v51 = vpop.permute.xlu1 %387  ;;  %v377_v52 = vpop.permute.xlu0 %376 }
  0xeb   : > { %v392_v53 = vsel %vm391_vm7, %v388_v51, %v390_v21  ;;  %v393_v54 = vsel %vm391_vm7, %v390_v21, %v388_v51  ;;  %v379_v55 = vsel %vm378_vm8, %v375_v18, %v377_v52  ;;  %v380_v56 = vsel %vm378_vm8, %v377_v52, %v375_v18  ;;  %v1884_v57 = vpop.permute.xlu2 %476  ;;  %v363_v18 = vld [vmem:[#allocation7 + $0x8] sm:$0xc0]  ;;  %v464_v52 = vld [vmem:[#allocation7 + $0x20] sm:$0xc] }
  0xec   : > { %v402_v59 = vmul.f32 %v398_v43, %v393_v54  ;;  %v403_v60 = vmul.f32 %v399_v44, %v392_v53  ;;  %v383_v61 = vmul.f32 %v381_v45, %v380_v56  ;;  %v384_v62 = vmul.f32 %v382_v46, %v379_v55 }
  0xed   : > { %v367_v30 = vrot.slane %v363_v18, 6  ;;  %vm620_vm7 = vcmp.lt.s32.totalorder %v1846_v14, 15  ;;  %vm658_vm8 = vcmp.lt.s32.totalorder %v1846_v14, 13 }
  0xee   : > { %v1886_v2 = vadd.f32 %v402_v59, %v332_v47  ;;  %v1888_v3 = vadd.f32 %v403_v60, %v333_v48  ;;  %v385_v4 = vadd.f32 %v383_v61, %v313_v49  ;;  %v386_v5 = vadd.f32 %v384_v62, %v314_v50 }
  0xef   : > { %v371_v40 = vmul.f32 %v367_v30, %v1873_v34 }
  0xf0   : > { %789 = vrot.lane.b32.xlu1 %v1810_v12, %s1647_s19  ;;  %787 = vrot.lane.b32.xlu0 %v1804_v9, %s1647_s19  ;;  %s1664_s19 = smov 77  }
  0xf1   : > { %800 = vrot.lane.b32.xlu2 %v1804_v9, %s1648_s21 }
  0xf2   : > { %v409_v11 = vpop.permute.xlu1 %408  ;;  %v407_v13 = vpop.permute.xlu0 %406 }
  0xf3   : > { %v411_v19 = vsel %vm410_vm9, %v407_v13, %v409_v11  ;;  %v412_v20 = vsel %vm410_vm9, %v409_v11, %v407_v13  ;;  %v1894_v21 = vpop.permute.xlu2 %497  ;;  %vm639_vm9 = vcmp.lt.s32.totalorder %v1846_v14, 14 }
  0xf4   : > { %v421_v24 = vmul.f32 %v417_v8, %v412_v20  ;;  %v422_v25 = vmul.f32 %v418_v10, %v411_v19  ;;  %v506_v8 = vrot.slane %v502_v0, 6  ;;  %v507_v10 = vrot.slane %v503_v1, 6 }
  0xf6   : > { %v1898_v31 = vadd.f32 %v421_v24, %v351_v22  ;;  %v1900_v32 = vadd.f32 %v422_v25, %v352_v23 }
  0xf8   : > { %819 = vrot.lane.b32.xlu1 %v1804_v9, %s1649_s22  ;;  %802 = vrot.lane.b32.xlu0 %v1810_v12, %s1648_s21  ;;  %s1665_s21 = smov 82  }
  0xf9   : > { %821 = vrot.lane.b32.xlu2 %v1810_v12, %s1649_s22  ;;  %s1666_s22 = smov 79  }
  0xfa   : > { %v445_v41 = vpop.permute.xlu1 %444  ;;  %v428_v42 = vpop.permute.xlu0 %427 }
  0xfb   : > { %v449_v43 = vsel %vm448_vm10, %v445_v41, %v1877_v36  ;;  %v450_v44 = vsel %vm448_vm10, %v1877_v36, %v445_v41  ;;  %v430_v45 = vsel %vm429_vm11, %v1867_v28, %v428_v42  ;;  %v431_v46 = vsel %vm429_vm11, %v428_v42, %v1867_v28  ;;  %v1913_v47 = vpop.permute.xlu2 %527  ;;  %v553_v41 = vld [vmem:[#allocation7 + $0x30] sm:$0x30]  ;;  %v554_v42 = vld [vmem:[#allocation7 + $0x38] sm:$0x30] }
  0xfc   : > { %v453_v48 = vmul.f32 %v451_v37, %v450_v44  ;;  %v454_v49 = vmul.f32 %v452_v38, %v449_v43  ;;  %v440_v50 = vmul.f32 %v436_v16, %v431_v46  ;;  %v441_v51 = vmul.f32 %v437_v17, %v430_v45  ;;  %v534_v43 = vld [vmem:[#allocation7 + $0x30] sm:$0xc]  ;;  %v535_v44 = vld [vmem:[#allocation7 + $0x38] sm:$0xc] }
  0xfd   : > { %v468_v28 = vrot.slane %v464_v52, 2  ;;  %v469_v36 = vrot.slane %v465_v35, 2  ;;  %vm671_vm10 = vcmp.lt.s32.totalorder %v1846_v14, 3  ;;  %vm709_vm11 = vcmp.lt.s32.totalorder %v1846_v14, 1 }
  0xfe   : > { %v1915_v53 = vadd.f32 %v453_v48, %v385_v4  ;;  %v1917_v34 = vadd.f32 %v454_v49, %v386_v5  ;;  %v442_v54 = vadd.f32 %v440_v50, %v370_v39  ;;  %v443_v55 = vadd.f32 %v441_v51, %v371_v40  ;;  %v483_v4 = vld [vmem:[#allocation7 + $0x20] sm:$0x30]  ;;  %v484_v5 = vld [vmem:[#allocation7 + $0x28] sm:$0x30] }
  0xff   : > { %v487_v11 = vrot.slane %v483_v4, 4  ;;  %v488_v13 = vrot.slane %v484_v5, 4  ;;  %v557_v48 = vrot.slane %v553_v41, 4  ;;  %v558_v49 = vrot.slane %v554_v42, 4 }
 0x100   : > { %840 = vrot.lane.b32.xlu1 %v1810_v12, %s1650_s23  ;;  %838 = vrot.lane.b32.xlu0 %v1804_v9, %s1650_s23  ;;  %v538_v50 = vrot.slane %v534_v43, 2  ;;  %v539_v51 = vrot.slane %v535_v44, 2  ;;  %s1667_s23 = smov 78  }
 0x101   : > { %857 = vrot.lane.b32.xlu2 %v1804_v9, %s1651_s25 }
 0x102   : > { %v460_v56 = vpop.permute.xlu1 %459  ;;  %v458_v58 = vpop.permute.xlu0 %457 }
 0x103   : > { %v462_v59 = vsel %vm461_vm12, %v458_v58, %v460_v56  ;;  %v463_v60 = vsel %vm461_vm12, %v460_v56, %v458_v58  ;;  %v1923_v61 = vpop.permute.xlu2 %548  ;;  %vm690_vm12 = vcmp.lt.s32.totalorder %v1846_v14, 2 }
 0x104   : > { %v472_v62 = vmul.f32 %v468_v28, %v463_v60  ;;  %v473_v63 = vmul.f32 %v469_v36, %v462_v59  ;;  %v572_v60 = vld [vmem:[#allocation7 + $0x30] sm:$0xc0] }
 0x106   : > { %v1926_v6 = vadd.f32 %v472_v62, %v1886_v2  ;;  %v1929_v7 = vadd.f32 %v473_v63, %v1888_v3  ;;  %v573_v62 = vld [vmem:[#allocation7 + $0x38] sm:$0xc0] }
 0x107   : > { %v577_v4 = vrot.slane %v573_v62, 6 }
 0x108   : > { %870 = vrot.lane.b32.xlu1 %v1804_v9, %s1652_s27  ;;  %859 = vrot.lane.b32.xlu0 %v1810_v12, %s1651_s25  ;;  %s1326_s25 = sshll.u32 %s1776_s24, 1 }
 0x109   : > { %872 = vrot.lane.b32.xlu2 %v1810_v12, %s1652_s27  ;;  %s1330_s27 = sshll.u32 %s1605_s12, 1  ;;  %s194_s12 = scalar_lea.vmem [#allocation9], %s1326_s25 }
 0x10a   : > { %v496_v2 = vpop.permute.xlu1 %495  ;;  %v479_v15 = vpop.permute.xlu0 %478 }
 0x10b   : > { %v500_v3 = vsel %vm499_vm13, %v496_v2, %v1894_v21  ;;  %v501_v18 = vsel %vm499_vm13, %v1894_v21, %v496_v2  ;;  %v481_v19 = vsel %vm480_vm14, %v1884_v57, %v479_v15  ;;  %v482_v20 = vsel %vm480_vm14, %v479_v15, %v1884_v57  ;;  %v1940_v22 = vpop.permute.xlu2 %584  ;;  %v521_v57 = vld [vmem:[#allocation7 + $0x30] sm:$0x3]  ;;  %v522_v21 = vld [vmem:[#allocation7 + $0x38] sm:$0x3]  ;;  %v604_v2 = vld [vmem:[#allocation7 + $0x40] sm:$0xc] }
 0x10c   : > { %v510_v23 = vmul.f32 %v506_v8, %v501_v18  ;;  %v511_v24 = vmul.f32 %v507_v10, %v500_v3  ;;  %v491_v25 = vmul.f32 %v487_v11, %v482_v20  ;;  %v492_v26 = vmul.f32 %v488_v13, %v481_v19  ;;  %v605_v15 = vld [vmem:[#allocation7 + $0x48] sm:$0xc] }
 0x10d   : > { %v608_v19 = vrot.slane %v604_v2, 2  ;;  %v609_v20 = vrot.slane %v605_v15, 2  ;;  %vm734_vm13 = vcmp.lt.s32.totalorder %v1846_v14, 127  ;;  %vm772_vm14 = vcmp.lt.s32.totalorder %v1846_v14, 125 }
 0x10e   : > { %v1942_v27 = vadd.f32 %v510_v23, %v442_v54  ;;  %v1944_v29 = vadd.f32 %v511_v24, %v443_v55  ;;  %v493_v30 = vadd.f32 %v491_v25, %v1898_v31  ;;  %v494_v16 = vadd.f32 %v492_v26, %v1900_v32  ;;  %v591_v23 = vld [vmem:[#allocation7 + $0x40] sm:$0x3]  ;;  %v592_v24 = vld [vmem:[#allocation7 + $0x48] sm:$0x3] }
 0x110   : > { %929 = vrot.lane.b32.xlu1 %v1810_v12, %s1653_s30  ;;  %927 = vrot.lane.b32.xlu0 %v1804_v9, %s1653_s30 }
 0x111   : > { %889 = vrot.lane.b32.xlu2 %v1804_v9, %s1654_s16 }
 0x112   : > { %v517_v17 = vpop.permute.xlu1 %516  ;;  %v515_v37 = vpop.permute.xlu0 %514 }
 0x113   : > { %v519_v38 = vsel %vm518_vm15, %v515_v37, %v517_v17  ;;  %v520_v39 = vsel %vm518_vm15, %v517_v17, %v515_v37  ;;  %v1952_v40 = vpop.permute.xlu2 %599  ;;  %vm753_vm15 = vcmp.lt.s32.totalorder %v1846_v14, 126 }
 0x114   : > { %v523_v31 = vmul.f32 %v521_v57, %v520_v39  ;;  %v524_v32 = vmul.f32 %v522_v21, %v519_v38  ;;  %v623_v39 = vld [vmem:[#allocation7 + $0x40] sm:$0x30] }
 0x116   : > { %v1955_v45 = vadd.f32 %v523_v31, %v1915_v53  ;;  %v1958_v46 = vadd.f32 %v524_v32, %v1917_v34  ;;  %v624_v31 = vld [vmem:[#allocation7 + $0x48] sm:$0x30] }
 0x117   : > { %v628_v43 = vrot.slane %v624_v31, 4 }
 0x118   : > { %940 = vrot.lane.b32.xlu1 %v1804_v9, %s1655_s20  ;;  %891 = vrot.lane.b32.xlu0 %v1810_v12, %s1654_s16 }
 0x119   : > { %942 = vrot.lane.b32.xlu2 %v1810_v12, %s1655_s20  ;;  %s1219_s20 = scalar_lea.hbm %s2176_s2, %s1330_s27 }
 0x11a   : > { %v547_v52 = vpop.permute.xlu1 %546  ;;  %v530_v35 = vpop.permute.xlu0 %529 }
 0x11b   : > { %v551_v53 = vsel %vm550_vm0, %v547_v52, %v1923_v61  ;;  %v552_v34 = vsel %vm550_vm0, %v1923_v61, %v547_v52  ;;  %v532_v54 = vsel %vm531_vm3, %v1913_v47, %v530_v35  ;;  %v533_v55 = vsel %vm531_vm3, %v530_v35, %v1913_v47  ;;  %v1969_v28 = vpop.permute.xlu2 %635  ;;  %v642_v52 = vld [vmem:[#allocation7 + $0x40] sm:$0xc0]  ;;  %v643_v35 = vld [vmem:[#allocation7 + $0x48] sm:$0xc0] }
 0x11c   : > { %v561_v36 = vmul.f32 %v557_v48, %v552_v34  ;;  %v562_v56 = vmul.f32 %v558_v49, %v551_v53  ;;  %v542_v58 = vmul.f32 %v538_v50, %v533_v55  ;;  %v543_v59 = vmul.f32 %v539_v51, %v532_v54 }
 0x11d   : > { %v576_v47 = vrot.slane %v572_v60, 6  ;;  %v646_v54 = vrot.slane %v642_v52, 6  ;;  %v647_v55 = vrot.slane %v643_v35, 6  ;;  %vm791_vm0 = vcmp.lt.s32.totalorder %v1846_v14, 115 }
 0x11e   : > { %v1971_v63 = vadd.f32 %v561_v36, %v493_v30  ;;  %v1973_v0 = vadd.f32 %v562_v56, %v494_v16  ;;  %v544_v1 = vadd.f32 %v542_v58, %v1926_v6  ;;  %v545_v61 = vadd.f32 %v543_v59, %v1929_v7  ;;  %v661_v36 = vld [vmem:[#allocation7 + $0x50] sm:$0x3]  ;;  %v662_v56 = vld [vmem:[#allocation7 + $0x58] sm:$0x3] }
 0x11f   : > { %vm823_vm3 = vcmp.lt.s32.totalorder %v1846_v14, 113 }
 0x120   : > { %999 = vrot.lane.b32.xlu1 %v1810_v12, %s1656_s28  ;;  %997 = vrot.lane.b32.xlu0 %v1804_v9, %s1656_s28  ;;  %s1221_s28 = sshll.u32 %s194_s12, 4  ;;  %s1222_s28 = int_to_ptr.vmem [resolvable:$true] %s1221_s28 }
 0x121   : > { %908 = vrot.lane.b32.xlu2 %v1804_v9, %s1657_s29 }
 0x122   : > { %v568_v5 = vpop.permute.xlu1 %567  ;;  %v566_v8 = vpop.permute.xlu0 %565 }
 0x123   : > { %v570_v10 = vsel %vm569_vm4, %v566_v8, %v568_v5  ;;  %v571_v11 = vsel %vm569_vm4, %v568_v5, %v566_v8  ;;  %v1981_v13 = vpop.permute.xlu2 %656  ;;  %v674_v8 = vld [vmem:[#allocation7 + $0x50] sm:$0xc]  ;;  %vm804_vm4 = vcmp.lt.s32.totalorder %v1846_v14, 114 }
 0x124   : > { %v580_v6 = vmul.f32 %v576_v47, %v571_v11  ;;  %v581_v7 = vmul.f32 %v577_v4, %v570_v10  ;;  %v675_v10 = vld [vmem:[#allocation7 + $0x58] sm:$0xc] }
 0x125   : > { %v679_v2 = vrot.slane %v675_v10, 2 }
 0x126   : > { %v1984_v3 = vadd.f32 %v580_v6, %v1942_v27  ;;  %v1987_v18 = vadd.f32 %v581_v7, %v1944_v29 }
 0x128   : > { %959 = vrot.lane.b32.xlu1 %v1804_v9, %s1658_s6  ;;  %910 = vrot.lane.b32.xlu0 %v1810_v12, %s1657_s29  ;;  %s1223_s29 = sshll.u32 %s1219_s20, 4  ;;  %s1224_s29 = int_to_ptr.hbm [resolvable:$true] %s1223_s29 }
 0x129   : > { %961 = vrot.lane.b32.xlu2 %v1810_v12, %s1658_s6  ;;  %s1209_s6 = scalar_lea.sflag [#allocation6], %s1776_s24 }
 0x12a   : > { %v598_v25 = vpop.permute.xlu1 %597  ;;  %v587_v26 = vpop.permute.xlu0 %586 }
 0x12b   : > { %v602_v27 = vsel %vm601_vm5, %v598_v25, %v1952_v40  ;;  %v603_v29 = vsel %vm601_vm5, %v1952_v40, %v598_v25  ;;  %v589_v30 = vsel %vm588_vm6, %v1940_v22, %v587_v26  ;;  %v590_v16 = vsel %vm588_vm6, %v587_v26, %v1940_v22  ;;  %v1998_v57 = vpop.permute.xlu2 %686  ;;  %v712_v25 = vld [vmem:[#allocation7 + $0x50] sm:$0xc0]  ;;  %v713_v26 = vld [vmem:[#allocation7 + $0x58] sm:$0xc0] }
 0x12c   : > { %v612_v21 = vmul.f32 %v608_v19, %v603_v29  ;;  %v613_v17 = vmul.f32 %v609_v20, %v602_v27  ;;  %v593_v37 = vmul.f32 %v591_v23, %v590_v16  ;;  %v594_v38 = vmul.f32 %v592_v24, %v589_v30  ;;  %v693_v27 = vld [vmem:[#allocation7 + $0x50] sm:$0x30]  ;;  %v694_v29 = vld [vmem:[#allocation7 + $0x58] sm:$0x30] }
 0x12d   : > { %v627_v22 = vrot.slane %v623_v39, 4  ;;  %vm842_vm5 = vcmp.lt.s32.totalorder %v1846_v14, 112  ;;  %vm874_vm6 = vcmp.lt.s32.totalorder %v1846_v14, 110 }
 0x12e   : > { %v2000_v32 = vadd.f32 %v612_v21, %v544_v1  ;;  %v2002_v41 = vadd.f32 %v613_v17, %v545_v61  ;;  %v595_v42 = vadd.f32 %v593_v37, %v1955_v45  ;;  %v596_v40 = vadd.f32 %v594_v38, %v1958_v46 }
 0x12f   : > { %v716_v21 = vrot.slane %v712_v25, 6  ;;  %v717_v17 = vrot.slane %v713_v26, 6  ;;  %v697_v37 = vrot.slane %v693_v27, 4  ;;  %v698_v38 = vrot.slane %v694_v29, 4  ;;  %v724_v26 = vld [vmem:[#allocation7 + $0x60] sm:$0x3] }
 0x130   : > { %1012 = vrot.lane.b32.xlu1 %v1810_v12, %s1659_s7  ;;  %1010 = vrot.lane.b32.xlu0 %v1804_v9, %s1659_s7  ;;  %v725_v27 = vld [vmem:[#allocation7 + $0x68] sm:$0x3]  ;;  %s1541_s7 = sshra.s32 %s1224_s29, 4  ;;  %s1542_s7 = int_to_ptr.hbm [resolvable:$true] %s1541_s7 }
 0x131   : > { %1067 = vrot.lane.b32.xlu2 %v1804_v9, %s1660_s8  ;;  %p1548_p10 = scmp.lt.s32.totalorder %s1542_s7, %s2176_s2 }
 0x132   : > { %v619_v44 = vpop.permute.xlu1 %618  ;;  %v617_v48 = vpop.permute.xlu0 %616 }
 0x133   : > { %v621_v49 = vsel %vm620_vm7, %v617_v48, %v619_v44  ;;  %v622_v50 = vsel %vm620_vm7, %v619_v44, %v617_v48  ;;  %v2010_v51 = vpop.permute.xlu2 %707  ;;  %vm861_vm7 = vcmp.lt.s32.totalorder %v1846_v14, 111 }
 0x134   : > { %v631_v45 = vmul.f32 %v627_v22, %v622_v50  ;;  %v632_v46 = vmul.f32 %v628_v43, %v621_v49  ;;  %v737_v50 = vld [vmem:[#allocation7 + $0x60] sm:$0xc] }
 0x136   : > { %v2013_v53 = vadd.f32 %v631_v45, %v1971_v63  ;;  %v2016_v34 = vadd.f32 %v632_v46, %v1973_v0  ;;  %v738_v45 = vld [vmem:[#allocation7 + $0x68] sm:$0xc] }
 0x138   : > { %978 = vrot.lane.b32.xlu1 %v1804_v9, %s1661_s17  ;;  %1069 = vrot.lane.b32.xlu0 %v1810_v12, %s1660_s8  ;;  %s1543_s8 = scalar_lea.hbm %s1542_s7, 2 }
 0x139   : > { %980 = vrot.lane.b32.xlu2 %v1810_v12, %s1661_s17  ;;  %p1544_p1 = scmp.ne.s32.totalorder %s1542_s7, %s1543_s8 }
 0x13a   : > { %v655_v58 = vpop.permute.xlu1 %654  ;;  %v638_v59 = vpop.permute.xlu0 %637 }
 0x13b   : > { %v659_v60 = vsel %vm658_vm8, %v655_v58, %v1981_v13  ;;  %v660_v62 = vsel %vm658_vm8, %v1981_v13, %v655_v58  ;;  %v640_v63 = vsel %vm639_vm9, %v1969_v28, %v638_v59  ;;  %v641_v0 = vsel %vm639_vm9, %v638_v59, %v1969_v28  ;;  %v2027_v1 = vpop.permute.xlu2 %749  ;;  %p1545_p3 = pnand %p1544_p1, %p1754_p4 }
 0x13c   : > { %v663_v61 = vmul.f32 %v661_v36, %v660_v62  ;;  %v664_v47 = vmul.f32 %v662_v56, %v659_v60  ;;  %v650_v4 = vmul.f32 %v646_v54, %v641_v0  ;;  %v651_v5 = vmul.f32 %v647_v55, %v640_v63  ;;  %v775_v60 = vld [vmem:[#allocation7 + $0x60] sm:$0xc0]  ;;  %v776_v62 = vld [vmem:[#allocation7 + $0x68] sm:$0xc0]  ;;  %v756_v63 = vld [vmem:[#allocation7 + $0x60] sm:$0x30] }
 0x13d   : > { %v678_v28 = vrot.slane %v674_v8, 2  ;;  %v757_v0 = vld [vmem:[#allocation7 + $0x68] sm:$0x30]  ;;  %v760_v8 = vrot.slane %v756_v63, 4  ;;  %vm931_vm8 = vcmp.lt.s32.totalorder %v1846_v14, 98  ;;  %vm944_vm9 = vcmp.lt.s32.totalorder %v1846_v14, 97  ;;  %p1546_p9 = pneg %p1545_p3 }
 0x13e   : > { %v2029_v11 = vadd.f32 %v663_v61, %v595_v42  ;;  %v2031_v6 = vadd.f32 %v664_v47, %v596_v40  ;;  %v652_v7 = vadd.f32 %v650_v4, %v1984_v3  ;;  %v653_v13 = vadd.f32 %v651_v5, %v1987_v18 }
 0x13f   : > { %v779_v4 = vrot.slane %v775_v60, 6  ;;  %v780_v5 = vrot.slane %v776_v62, 6  ;;  %v761_v10 = vrot.slane %v757_v0, 4  ;;  %v845_v60 = vld [vmem:[#allocation7 + $0x70] sm:$0xc0] }
 0x140   : > { %1031 = vrot.lane.b32.xlu1 %v1810_v12, %s1662_s18  ;;  %1029 = vrot.lane.b32.xlu0 %v1804_v9, %s1662_s18  ;;  %v846_v62 = vld [vmem:[#allocation7 + $0x78] sm:$0xc0] }
 0x141   : > { %1080 = vrot.lane.b32.xlu2 %v1804_v9, %s1663_s15 }
 0x142   : > { %v670_v15 = vpop.permute.xlu1 %669  ;;  %v668_v19 = vpop.permute.xlu0 %667 }
 0x143   : > { %v672_v20 = vsel %vm671_vm10, %v668_v19, %v670_v15  ;;  %v673_v23 = vsel %vm671_vm10, %v670_v15, %v668_v19  ;;  %v2039_v24 = vpop.permute.xlu2 %770  ;;  %vm893_vm10 = vcmp.lt.s32.totalorder %v1846_v14, 109 }
 0x144   : > { %v682_v3 = vmul.f32 %v678_v28, %v673_v23  ;;  %v683_v18 = vmul.f32 %v679_v2, %v672_v20 }
 0x146   : > { %v684_v30 = vadd.f32 %v682_v3, %v2000_v32  ;;  %v685_v16 = vadd.f32 %v683_v18, %v2002_v41 }
 0x148   : > { %1137 = vrot.lane.b32.xlu1 %v1804_v9, %s1664_s19  ;;  %1082 = vrot.lane.b32.xlu0 %v1810_v12, %s1663_s15  ;;  %s1547_s15 = scalar_lea.hbm %s2176_s2, 4 }
 0x149   : > { %1139 = vrot.lane.b32.xlu2 %v1810_v12, %s1664_s19  ;;  %p1549_p11 = scmp.lt.s32.totalorder %s1547_s15, %s1543_s8 }
 0x14a   : > { %v706_v39 = vpop.permute.xlu1 %705  ;;  %v689_v31 = vpop.permute.xlu0 %688 }
 0x14b   : > { %v710_v32 = vsel %vm709_vm11, %v706_v39, %v2010_v51  ;;  %v711_v41 = vsel %vm709_vm11, %v2010_v51, %v706_v39  ;;  %v691_v42 = vsel %vm690_vm12, %v1998_v57, %v689_v31  ;;  %v692_v40 = vsel %vm690_vm12, %v689_v31, %v1998_v57  ;;  %v2052_v22 = vpop.permute.xlu2 %800  ;;  %p1550_p12 = por %p1549_p11, %p1548_p10 }
 0x14c   : > { %v720_v43 = vmul.f32 %v716_v21, %v711_v41  ;;  %v721_v44 = vmul.f32 %v717_v17, %v710_v32  ;;  %v701_v48 = vmul.f32 %v697_v37, %v692_v40  ;;  %v702_v49 = vmul.f32 %v698_v38, %v691_v42  ;;  %v794_v37 = vld [vmem:[#allocation7 + $0x70] sm:$0x3] }
 0x14d   : > { %v741_v57 = vrot.slane %v737_v50, 2  ;;  %v742_v51 = vrot.slane %v738_v45, 2  ;;  %v727_v17 = vmul.f32 %v725_v27, %v1810_v12  ;;  %v808_v50 = vld [vmem:[#allocation7 + $0x78] sm:$0xc]  ;;  %v865_v27 = vld [vmem:[#allocation7 + $0x88] sm:$0x3]  ;;  %p1551_p13 = pnand %p1550_p12, %p1546_p9 }
 0x14e   : > { %v722_v46 = vadd.f32 %v720_v43, %v652_v7  ;;  %v723_v52 = vadd.f32 %v721_v44, %v653_v13  ;;  %v703_v35 = vadd.f32 %v701_v48, %v2013_v53  ;;  %v704_v54 = vadd.f32 %v702_v49, %v2016_v34  ;;  %v826_v48 = vld [vmem:[#allocation7 + $0x70] sm:$0x30]  ;;  %v827_v49 = vld [vmem:[#allocation7 + $0x78] sm:$0x30] }
 0x14f   : > { %v729_v42 = vadd.f32 %v727_v17, %v2031_v6  ;;  %vm1001_vm11 = vcmp.lt.s32.totalorder %v1846_v14, 94  ;;  %vm963_vm12 = vcmp.lt.s32.totalorder %v1846_v14, 96 }
 0x150   : > { %1050 = vrot.lane.b32.xlu1 %v1810_v12, %s1665_s21  ;;  %1048 = vrot.lane.b32.xlu0 %v1804_v9, %s1665_s21 }
 0x151   : > { %1099 = vrot.lane.b32.xlu2 %v1804_v9, %s1666_s22 }
 0x152   : > { %v733_v55 = vpop.permute.xlu1 %732  ;;  %v731_v36 = vpop.permute.xlu0 %730 }
 0x153   : > { %v735_v56 = vsel %vm734_vm13, %v731_v36, %v733_v55  ;;  %v736_v58 = vsel %vm734_vm13, %v733_v55, %v731_v36  ;;  %v2060_v59 = vpop.permute.xlu2 %821  ;;  %vm912_vm13 = vcmp.lt.s32.totalorder %v1846_v14, 99 }
 0x154   : > { %v745_v53 = vmul.f32 %v741_v57, %v735_v56  ;;  %v746_v34 = vmul.f32 %v742_v51, %v736_v58 }
 0x156   : > { %v2062_v61 = vadd.f32 %v745_v53, %v684_v30  ;;  %v2064_v47 = vadd.f32 %v746_v34, %v685_v16 }
 0x158   : > { %1118 = vrot.lane.b32.xlu1 %v1804_v9, %s1667_s23  ;;  %1101 = vrot.lane.b32.xlu0 %v1810_v12, %s1666_s22 }
 0x159   : > { %1120 = vrot.lane.b32.xlu2 %v1810_v12, %s1667_s23  ;;  %v807_v12 = vld [vmem:[#allocation7 + $0x70] sm:$0xc] }
 0x15a   : > { %v769_v7 = vpop.permute.xlu1 %768  ;;  %v752_v13 = vpop.permute.xlu0 %751 }
 0x15b   : > { %v773_v28 = vsel %vm772_vm14, %v769_v7, %v2039_v24  ;;  %v774_v2 = vsel %vm772_vm14, %v2039_v24, %v769_v7  ;;  %v754_v15 = vsel %vm753_vm15, %v2027_v1, %v752_v13  ;;  %v755_v19 = vsel %vm753_vm15, %v752_v13, %v2027_v1  ;;  %v2075_v20 = vpop.permute.xlu2 %857  ;;  %v795_v1 = vld [vmem:[#allocation7 + $0x78] sm:$0x3] }
 0x15c   : > { %v783_v23 = vmul.f32 %v779_v4, %v773_v28  ;;  %v784_v3 = vmul.f32 %v780_v5, %v774_v2  ;;  %v764_v18 = vmul.f32 %v760_v8, %v754_v15  ;;  %v765_v25 = vmul.f32 %v761_v10, %v755_v19  ;;  %v877_v19 = vld [vmem:[#allocation7 + $0x80] sm:$0xc] }
 0x15d   : > { %v726_v24 = vmul.f32 %v724_v26, %v1804_v9  ;;  %v830_v9 = vrot.slane %v826_v48, 4  ;;  %v849_v8 = vrot.slane %v845_v60, 6  ;;  %v864_v26 = vld [vmem:[#allocation7 + $0x80] sm:$0x3]  ;;  %vm1014_vm14 = vcmp.lt.s32.totalorder %v1846_v14, 93 }
 0x15e   : > { %v785_v29 = vadd.f32 %v783_v23, %v722_v46  ;;  %v786_v30 = vadd.f32 %v784_v3, %v723_v52  ;;  %v766_v16 = vadd.f32 %v764_v18, %v703_v35  ;;  %v767_v21 = vadd.f32 %v765_v25, %v704_v54  ;;  %v878_v23 = vld [vmem:[#allocation7 + $0x88] sm:$0xc] }
 0x15f   : > { %v728_v40 = vadd.f32 %v726_v24, %v2029_v11  ;;  %v831_v52 = vrot.slane %v827_v49, 4  ;;  %v811_v35 = vrot.slane %v807_v12, 2  ;;  %v812_v54 = vrot.slane %v808_v50, 2 }
 0x160   : > { %vm982_vm15 = vcmp.lt.s32.totalorder %v1846_v14, 95 }
 0x162   : > { %v790_v38 = vpop.permute.xlu1 %789  ;;  %v788_v39 = vpop.permute.xlu0 %787 }
 0x163   : > { %v792_v31 = vsel %vm791_vm0, %v788_v39, %v790_v38  ;;  %v793_v32 = vsel %vm791_vm0, %v790_v38, %v788_v39  ;;  %v873_v41 = vpop.permute.xlu2 %872  ;;  %vm1071_vm0 = vcmp.lt.s32.totalorder %v1846_v14, 81 }
 0x164   : > { %v796_v43 = vmul.f32 %v794_v37, %v792_v31  ;;  %v797_v44 = vmul.f32 %v795_v1, %v793_v32 }
 0x166   : > { %v798_v45 = vadd.f32 %v796_v43, %v728_v40  ;;  %v799_v46 = vadd.f32 %v797_v44, %v729_v42  ;;  %v934_v43 = vld [vmem:[#allocation7 + $0x90] sm:$0x3]  ;;  %v935_v44 = vld [vmem:[#allocation7 + $0x98] sm:$0x3] }
 0x16a   : > { %v820_v57 = vpop.permute.xlu1 %819  ;;  %v803_v6 = vpop.permute.xlu0 %802 }
 0x16b   : > { %v824_v11 = vsel %vm823_vm3, %v820_v57, %v2060_v59  ;;  %v825_v51 = vsel %vm823_vm3, %v2060_v59, %v820_v57  ;;  %v805_v55 = vsel %vm804_vm4, %v2052_v22, %v803_v6  ;;  %v806_v36 = vsel %vm804_vm4, %v803_v6, %v2052_v22  ;;  %v2088_v63 = vpop.permute.xlu2 %889  ;;  %v897_v57 = vld [vmem:[#allocation7 + $0x88] sm:$0x30] }
 0x16c   : > { %v834_v56 = vmul.f32 %v830_v9, %v824_v11  ;;  %v835_v58 = vmul.f32 %v831_v52, %v825_v51  ;;  %v815_v53 = vmul.f32 %v811_v35, %v805_v55  ;;  %v816_v34 = vmul.f32 %v812_v54, %v806_v36  ;;  %v948_v35 = vld [vmem:[#allocation7 + $0x98] sm:$0xc]  ;;  %v896_v54 = vld [vmem:[#allocation7 + $0x80] sm:$0x30] }
 0x16d   : > { %v850_v22 = vrot.slane %v846_v62, 6  ;;  %v900_v51 = vrot.slane %v896_v54, 4  ;;  %v901_v55 = vrot.slane %v897_v57, 4  ;;  %vm1033_vm3 = vcmp.lt.s32.totalorder %v1846_v14, 83 }
 0x16e   : > { %v2090_v0 = vadd.f32 %v834_v56, %v766_v16  ;;  %v2092_v4 = vadd.f32 %v835_v58, %v767_v21  ;;  %v817_v5 = vadd.f32 %v815_v53, %v2062_v61  ;;  %v818_v59 = vadd.f32 %v816_v34, %v2064_v47 }
 0x16f   : > { %v881_v61 = vrot.slane %v877_v19, 2  ;;  %v882_v47 = vrot.slane %v878_v23, 2  ;;  %vm1141_vm4 = vcmp.lt.s32.totalorder %v1846_v14, 77 }
 0x172   : > { %v841_v10 = vpop.permute.xlu1 %840  ;;  %v839_v7 = vpop.permute.xlu0 %838 }
 0x173   : > { %v843_v13 = vsel %vm842_vm5, %v839_v7, %v841_v10  ;;  %v844_v28 = vsel %vm842_vm5, %v841_v10, %v839_v7  ;;  %v943_v25 = vpop.permute.xlu2 %942  ;;  %vm1084_vm5 = vcmp.lt.s32.totalorder %v1846_v14, 80 }
 0x174   : > { %v853_v2 = vmul.f32 %v849_v8, %v843_v13  ;;  %v854_v15 = vmul.f32 %v850_v22, %v844_v28 }
 0x176   : > { %v2097_v3 = vadd.f32 %v853_v2, %v785_v29  ;;  %v2099_v18 = vadd.f32 %v854_v15, %v786_v30  ;;  %v1004_v2 = vld [vmem:[#allocation7 + $0xa0] sm:$0x3]  ;;  %v1005_v15 = vld [vmem:[#allocation7 + $0xa8] sm:$0x3] }
 0x17a   : > { %v871_v16 = vpop.permute.xlu1 %870  ;;  %v860_v21 = vpop.permute.xlu0 %859 }
 0x17b   : > { %v875_v17 = vsel %vm874_vm6, %v871_v16, %v873_v41  ;;  %v876_v24 = vsel %vm874_vm6, %v873_v41, %v871_v16  ;;  %v862_v37 = vsel %vm861_vm7, %v2075_v20, %v860_v21  ;;  %v863_v29 = vsel %vm861_vm7, %v860_v21, %v2075_v20  ;;  %v909_v48 = vpop.permute.xlu2 %908  ;;  %v947_v20 = vld [vmem:[#allocation7 + $0x90] sm:$0xc]  ;;  %v915_v16 = vld [vmem:[#allocation7 + $0x80] sm:$0xc0]  ;;  %v916_v21 = vld [vmem:[#allocation7 + $0x88] sm:$0xc0] }
 0x17c   : > { %v885_v1 = vmul.f32 %v881_v61, %v875_v17  ;;  %v886_v30 = vmul.f32 %v882_v47, %v876_v24  ;;  %v866_v38 = vmul.f32 %v864_v26, %v862_v37  ;;  %v867_v39 = vmul.f32 %v865_v27, %v863_v29  ;;  %v966_v26 = vld [vmem:[#allocation7 + $0x90] sm:$0x30]  ;;  %v967_v27 = vld [vmem:[#allocation7 + $0x98] sm:$0x30] }
 0x17d   : > { %v919_v29 = vrot.slane %v915_v16, 6  ;;  %vm1052_vm6 = vcmp.lt.s32.totalorder %v1846_v14, 82  ;;  %vm1122_vm7 = vcmp.lt.s32.totalorder %v1846_v14, 78 }
 0x17e   : > { %v887_v31 = vadd.f32 %v885_v1, %v817_v5  ;;  %v888_v32 = vadd.f32 %v886_v30, %v818_v59  ;;  %v868_v42 = vadd.f32 %v866_v38, %v798_v45  ;;  %v869_v40 = vadd.f32 %v867_v39, %v799_v46 }
 0x17f   : > { %v951_v45 = vrot.slane %v947_v20, 2  ;;  %v952_v46 = vrot.slane %v948_v35, 2  ;;  %v920_v1 = vrot.slane %v916_v21, 6 }
 0x182   : > { %v930_v49 = vpop.permute.xlu1 %929  ;;  %v928_v12 = vpop.permute.xlu0 %927 }
 0x183   : > { %v932_v41 = vsel %vm931_vm8, %v928_v12, %v930_v49  ;;  %v933_v50 = vsel %vm931_vm8, %v930_v49, %v928_v12  ;;  %v962_v62 = vpop.permute.xlu2 %961  ;;  %v1017_v12 = vld [vmem:[#allocation7 + $0xa0] sm:$0xc]  ;;  %vm1103_vm8 = vcmp.lt.s32.totalorder %v1846_v14, 79 }
 0x184   : > { %v936_v9 = vmul.f32 %v934_v43, %v932_v41  ;;  %v937_v52 = vmul.f32 %v935_v44, %v933_v50  ;;  %v1018_v41 = vld [vmem:[#allocation7 + $0xa8] sm:$0xc]  ;;  %v1021_v54 = vrot.slane %v1017_v12, 2 }
 0x185   : > { %v1022_v57 = vrot.slane %v1018_v41, 2 }
 0x186   : > { %v938_v6 = vadd.f32 %v936_v9, %v868_v42  ;;  %v939_v11 = vadd.f32 %v937_v52, %v869_v40 }
 0x18a   : > { %v941_v36 = vpop.permute.xlu1 %940  ;;  %v892_v56 = vpop.permute.xlu0 %891 }
 0x18b   : > { %v945_v58 = vsel %vm944_vm9, %v941_v36, %v943_v25  ;;  %v946_v53 = vsel %vm944_vm9, %v943_v25, %v941_v36  ;;  %v894_v34 = vsel %vm893_vm10, %v2088_v63, %v892_v56  ;;  %v895_v60 = vsel %vm893_vm10, %v892_v56, %v2088_v63  ;;  %v1068_v17 = vpop.permute.xlu2 %1067  ;;  %v986_v36 = vld [vmem:[#allocation7 + $0x98] sm:$0xc0] }
 0x18c   : > { %v955_v5 = vmul.f32 %v951_v45, %v945_v58  ;;  %v956_v59 = vmul.f32 %v952_v46, %v946_v53  ;;  %v904_v8 = vmul.f32 %v900_v51, %v894_v34  ;;  %v905_v22 = vmul.f32 %v901_v55, %v895_v60  ;;  %v985_v55 = vld [vmem:[#allocation7 + $0x90] sm:$0xc0]  ;;  %v1075_v34 = vld [vmem:[#allocation7 + $0xb8] sm:$0x3] }
 0x18d   : > { %v990_v53 = vrot.slane %v986_v36, 6 }
 0x18e   : > { %v957_v10 = vadd.f32 %v955_v5, %v887_v31  ;;  %v958_v7 = vadd.f32 %v956_v59, %v888_v32  ;;  %v906_v13 = vadd.f32 %v904_v8, %v2090_v0  ;;  %v907_v28 = vadd.f32 %v905_v22, %v2092_v4 }
 0x18f   : > { %v970_v0 = vrot.slane %v966_v26, 4  ;;  %v971_v4 = vrot.slane %v967_v27, 4 }
 0x192   : > { %v1000_v19 = vpop.permute.xlu1 %999  ;;  %v998_v23 = vpop.permute.xlu0 %997 }
 0x193   : > { %v1002_v25 = vsel %vm1001_vm11, %v998_v23, %v1000_v19  ;;  %v1003_v61 = vsel %vm1001_vm11, %v1000_v19, %v998_v23  ;;  %v981_v35 = vpop.permute.xlu2 %980  ;;  %v1037_v19 = vld [vmem:[#allocation7 + $0xa8] sm:$0x30] }
 0x194   : > { %v1006_v63 = vmul.f32 %v1004_v2, %v1002_v25  ;;  %v1007_v47 = vmul.f32 %v1005_v15, %v1003_v61  ;;  %v1041_v26 = vrot.slane %v1037_v19, 4 }
 0x196   : > { %v1008_v24 = vadd.f32 %v1006_v63, %v938_v6  ;;  %v1009_v37 = vadd.f32 %v1007_v47, %v939_v11 }
 0x19a   : > { %v960_v30 = vpop.permute.xlu1 %959  ;;  %v911_v38 = vpop.permute.xlu0 %910 }
 0x19b   : > { %v964_v39 = vsel %vm963_vm12, %v960_v30, %v962_v62  ;;  %v965_v31 = vsel %vm963_vm12, %v962_v62, %v960_v30  ;;  %v913_v32 = vsel %vm912_vm13, %v909_v48, %v911_v38  ;;  %v914_v42 = vsel %vm912_vm13, %v911_v38, %v909_v48  ;;  %v1081_v60 = vpop.permute.xlu2 %1080  ;;  %v1088_v30 = vld [vmem:[#allocation7 + $0xb8] sm:$0xc] }
 0x19c   : > { %v974_v40 = vmul.f32 %v970_v0, %v964_v39  ;;  %v975_v43 = vmul.f32 %v971_v4, %v965_v31  ;;  %v923_v44 = vmul.f32 %v919_v29, %v913_v32  ;;  %v924_v49 = vmul.f32 %v920_v1, %v914_v42  ;;  %v1087_v1 = vld [vmem:[#allocation7 + $0xb0] sm:$0xc]  ;;  %v1144_v31 = vld [vmem:[#allocation7 + $0xc0] sm:$0x3]  ;;  %v1145_v32 = vld [vmem:[#allocation7 + $0xc8] sm:$0x3] }
 0x19e   : > { %v976_v50 = vadd.f32 %v974_v40, %v906_v13  ;;  %v977_v9 = vadd.f32 %v975_v43, %v907_v28  ;;  %v925_v52 = vadd.f32 %v923_v44, %v2097_v3  ;;  %v926_v20 = vadd.f32 %v924_v49, %v2099_v18  ;;  %v1074_v18 = vld [vmem:[#allocation7 + $0xb0] sm:$0x3] }
 0x19f   : > { %v989_v3 = vrot.slane %v985_v55, 6 }
 0x1a2   : > { %v1013_v6 = vpop.permute.xlu1 %1012  ;;  %v1011_v11 = vpop.permute.xlu0 %1010 }
 0x1a3   : > { %v1015_v48 = vsel %vm1014_vm14, %v1011_v11, %v1013_v6  ;;  %v1016_v45 = vsel %vm1014_vm14, %v1013_v6, %v1011_v11  ;;  %v1140_v29 = vpop.permute.xlu2 %1139 }
 0x1a4   : > { %v1025_v46 = vmul.f32 %v1021_v54, %v1015_v48  ;;  %v1026_v51 = vmul.f32 %v1022_v57, %v1016_v45 }
 0x1a6   : > { %v1027_v56 = vadd.f32 %v1025_v46, %v957_v10  ;;  %v1028_v58 = vadd.f32 %v1026_v51, %v958_v7  ;;  %v1036_v7 = vld [vmem:[#allocation7 + $0xa0] sm:$0x30] }
 0x1a7   : > { %v1040_v47 = vrot.slane %v1036_v7, 4 }
 0x1aa   : > { %v979_v62 = vpop.permute.xlu1 %978  ;;  %v1070_v5 = vpop.permute.xlu0 %1069 }
 0x1ab   : > { %v983_v59 = vsel %vm982_vm15, %v979_v62, %v981_v35  ;;  %v984_v8 = vsel %vm982_vm15, %v981_v35, %v979_v62  ;;  %v1072_v22 = vsel %vm1071_vm0, %v1068_v17, %v1070_v5  ;;  %v1073_v13 = vsel %vm1071_vm0, %v1070_v5, %v1068_v17  ;;  %v1100_v48 = vpop.permute.xlu2 %1099  ;;  %v1125_v62 = vld [vmem:[#allocation7 + $0xb0] sm:$0xc0]  ;;  %v1126_v5 = vld [vmem:[#allocation7 + $0xb8] sm:$0xc0] }
 0x1ac   : > { %v993_v28 = vmul.f32 %v989_v3, %v983_v59  ;;  %v994_v2 = vmul.f32 %v990_v53, %v984_v8  ;;  %v1076_v15 = vmul.f32 %v1074_v18, %v1072_v22  ;;  %v1077_v10 = vmul.f32 %v1075_v34, %v1073_v13  ;;  %v1106_v59 = vld [vmem:[#allocation7 + $0xb0] sm:$0x30]  ;;  %v1107_v8 = vld [vmem:[#allocation7 + $0xb8] sm:$0x30] }
 0x1ae   : > { %v995_v23 = vadd.f32 %v993_v28, %v925_v52  ;;  %v996_v25 = vadd.f32 %v994_v2, %v926_v20  ;;  %v1078_v61 = vadd.f32 %v1076_v15, %v1008_v24  ;;  %v1079_v63 = vadd.f32 %v1077_v10, %v1009_v37 }
 0x1af   : > { %v1091_v24 = vrot.slane %v1087_v1, 2  ;;  %v1092_v37 = vrot.slane %v1088_v30, 2  ;;  %v1130_v28 = vrot.slane %v1126_v5, 6  ;;  %v1110_v2 = vrot.slane %v1106_v59, 4 }
 0x1b0   : > { %v1111_v15 = vrot.slane %v1107_v8, 4 }
 0x1b2   : > { %v1032_v27 = vpop.permute.xlu1 %1031  ;;  %v1030_v16 = vpop.permute.xlu0 %1029 }
 0x1b3   : > { %v1034_v21 = vsel %vm1033_vm3, %v1030_v16, %v1032_v27  ;;  %v1035_v0 = vsel %vm1033_vm3, %v1032_v27, %v1030_v16  ;;  %v1121_v13 = vpop.permute.xlu2 %1120 }
 0x1b4   : > { %v1044_v4 = vmul.f32 %v1040_v47, %v1034_v21  ;;  %v1045_v17 = vmul.f32 %v1041_v26, %v1035_v0 }
 0x1b6   : > { %v1046_v38 = vadd.f32 %v1044_v4, %v976_v50  ;;  %v1047_v39 = vadd.f32 %v1045_v17, %v977_v9  ;;  %v1055_v50 = vld [vmem:[#allocation7 + $0xa0] sm:$0xc0]  ;;  %v1056_v9 = vld [vmem:[#allocation7 + $0xa8] sm:$0xc0] }
 0x1b7   : > { %v1059_v51 = vrot.slane %v1055_v50, 6  ;;  %v1060_v55 = vrot.slane %v1056_v9, 6 }
 0x1ba   : > { %v1138_v42 = vpop.permute.xlu1 %1137  ;;  %v1083_v40 = vpop.permute.xlu0 %1082 }
 0x1bb   : > { %v1142_v43 = vsel %vm1141_vm4, %v1138_v42, %v1140_v29  ;;  %v1143_v44 = vsel %vm1141_vm4, %v1140_v29, %v1138_v42  ;;  %v1085_v49 = vsel %vm1084_vm5, %v1081_v60, %v1083_v40  ;;  %v1086_v12 = vsel %vm1084_vm5, %v1083_v40, %v1081_v60 }
 0x1bc   : > { %v1146_v41 = vmul.f32 %v1144_v31, %v1142_v43  ;;  %v1147_v52 = vmul.f32 %v1145_v32, %v1143_v44  ;;  %v1095_v20 = vmul.f32 %v1091_v24, %v1085_v49  ;;  %v1096_v35 = vmul.f32 %v1092_v37, %v1086_v12 }
 0x1be   : > { %v1148_v54 = vadd.f32 %v1146_v41, %v1078_v61  ;;  %v1149_v57 = vadd.f32 %v1147_v52, %v1079_v63  ;;  %v1097_v6 = vadd.f32 %v1095_v20, %v1027_v56  ;;  %v1098_v11 = vadd.f32 %v1096_v35, %v1028_v58 }
 0x1bf   : > { %v1129_v58 = vrot.slane %v1125_v62, 6 }
 0x1c0   : > { %v1150_v45 = vadd.f32 %v1148_v54, %v1097_v6  ;;  %v1151_v46 = vadd.f32 %v1149_v57, %v1098_v11 }
 0x1c2   : > { %v1051_v36 = vpop.permute.xlu1 %1050  ;;  %v1049_v3 = vpop.permute.xlu0 %1048 }
 0x1c3   : > { %v1053_v53 = vsel %vm1052_vm6, %v1049_v3, %v1051_v36  ;;  %v1054_v18 = vsel %vm1052_vm6, %v1051_v36, %v1049_v3 }
 0x1c4   : > { %v1063_v34 = vmul.f32 %v1059_v51, %v1053_v53  ;;  %v1064_v60 = vmul.f32 %v1060_v55, %v1054_v18 }
 0x1c6   : > { %v1065_v22 = vadd.f32 %v1063_v34, %v995_v23  ;;  %v1066_v56 = vadd.f32 %v1064_v60, %v996_v25 }
 0x1ca   : > { %v1119_v10 = vpop.permute.xlu1 %1118  ;;  %v1102_v7 = vpop.permute.xlu0 %1101 }
 0x1cb   : > { %v1123_v19 = vsel %vm1122_vm7, %v1119_v10, %v1121_v13  ;;  %v1124_v61 = vsel %vm1122_vm7, %v1121_v13, %v1119_v10  ;;  %v1104_v63 = vsel %vm1103_vm8, %v1100_v48, %v1102_v7  ;;  %v1105_v47 = vsel %vm1103_vm8, %v1102_v7, %v1100_v48 }
 0x1cc   : > { %v1133_v26 = vmul.f32 %v1129_v58, %v1123_v19  ;;  %v1134_v27 = vmul.f32 %v1130_v28, %v1124_v61  ;;  %v1114_v16 = vmul.f32 %v1110_v2, %v1104_v63  ;;  %v1115_v23 = vmul.f32 %v1111_v15, %v1105_v47 }
 0x1ce   : > { %v1135_v25 = vadd.f32 %v1133_v26, %v1065_v22  ;;  %v1136_v21 = vadd.f32 %v1134_v27, %v1066_v56  ;;  %v1116_v0 = vadd.f32 %v1114_v16, %v1046_v38  ;;  %v1117_v4 = vadd.f32 %v1115_v23, %v1047_v39 }
 0x1d0   : > { %v1152_v17 = vadd.f32 %v1150_v45, %v1116_v0  ;;  %v1153_v29 = vadd.f32 %v1151_v46, %v1117_v4 }
 0x1d2   : > { %v1154_v1 = vadd.f32 %v1152_v17, %v1135_v25  ;;  %v1155_v14 = vadd.f32 %v1153_v29, %v1136_v21 }
 0x1d4   : > { %v1158_v30 = vrot.slane %v1154_v1, 1  ;;  %v1159_v24 = vrot.slane %v1155_v14, 1 }
 0x1d6   : > { %v1162_v37 = vadd.f32 %v1158_v30, %v1154_v1  ;;  %v1163_v31 = vadd.f32 %v1159_v24, %v1155_v14 }
 0x1d8   : > { %v1327_v32 = vmul.f32 -1.442695, %v1162_v37  ;;  %v1328_v42 = vmul.f32 -1.442695, %v1163_v31 }
 0x1da   : > { %1459 = vpow2.f32 %v1327_v32 }
 0x1db   : > { %1461 = vpow2.f32 %v1328_v42 }
 0x1e0   : > { %v1460_v40 = vpop.eup %1459 }
 0x1e1   : > { %v1462_v43 = vpop.eup %1461  ;;  %v1170_v44 = vadd.f32 1.0, %v1460_v40 }
 0x1e2   : > { %v1171_v49 = vadd.f32 1.0, %v1462_v43 }
 0x1e3   : > { %1463 = vrcp.f32 %v1170_v44  ;;  %vm1177_vm11 = vweird.f32 %v1170_v44  ;;  %v1183_v6 = vand.u32 2147483648, %v1170_v44  ;;  %v1181_v48 = vand.u32 2147483647, %v1170_v44 }
 0x1e4   : > { %1465 = vrcp.f32 %v1171_v49  ;;  %v1198_v50 = vand.u32 2147483648, %v1171_v49  ;;  %v1196_v54 = vand.u32 2147483647, %v1171_v49  ;;  %vm1192_vm13 = vweird.f32 %v1171_v49 }
 0x1e5   : > { %v1184_v36 = vor.u32 1.1754944e-38, %v1183_v6  ;;  %vm1182_vm0 = vcmp.eq.f32.partialorder %v1181_v48, 8.507059e+37 }
 0x1e6   : > { %v1199_v46 = vor.u32 1.1754944e-38, %v1198_v50  ;;  %vm1197_vm15 = vcmp.eq.f32.partialorder %v1196_v54, 8.507059e+37 }
 0x1e9   : > { %v1464_v38 = vpop.eup %1463 }
 0x1ea   : > { %v1466_v39 = vpop.eup %1465  ;;  %v1173_v12 = vmul.f32 %v1464_v38, %v1170_v44  ;;  %vm1178_vm9 = vweird.f32 %v1464_v38 }
 0x1eb   : > { %v1188_v41 = vmul.f32 %v1466_v39, %v1171_v49  ;;  %vm1193_vm10 = vweird.f32 %v1466_v39  ;;  %vm2131_vm12 = vmor %vm1177_vm11, %vm1178_vm9 }
 0x1ec   : > { %v1174_v52 = vsub.f32 1.0, %v1173_v12  ;;  %vm1194_vm14 = vmor %vm1192_vm13, %vm1193_vm10 }
 0x1ed   : > { %v1189_v20 = vsub.f32 1.0, %v1188_v41 }
 0x1ee   : > { %v1175_v35 = vmul.f32 %v1464_v38, %v1174_v52 }
 0x1ef   : > { %v1190_v9 = vmul.f32 %v1466_v39, %v1189_v20 }
 0x1f0   : > { %v1176_v57 = vadd.f32 %v1464_v38, %v1175_v35 }
 0x1f1   : > { %v1191_v45 = vadd.f32 %v1466_v39, %v1190_v9 }
 0x1f2   : > { %v1180_v51 = vsel %vm2131_vm12, %v1464_v38, %v1176_v57 }
 0x1f3   : > { %v1195_v55 = vsel %vm1194_vm14, %v1466_v39, %v1191_v45  ;;  %v1185_v18 = vsel %vm1182_vm0, %v1184_v36, %v1180_v51 }
 0x1f4   : > { %v1200_v3 = vsel %vm1197_vm15, %v1199_v46, %v1195_v55 }
 0x1f5   : > { %v1204_v53 = vrot.slane %v1200_v3, 7 }
 0x1f7   : > { %v1205_v34 = vsel %vm229_vm1, %v1185_v18, %v1204_v53 }
 0x1f8   : > { %1207 = vst.msk [vmem:[%s194_s12] sm:$0x3] %vm1794_vm2, %v1205_v34 }
 0x1f9   : > { %1554 = shalt.err (!%p1551_p13)
}
 0x1fa   : > { %1340 = dma.vmem_to_hbm [thread:$0]  (%p1754_p4), %s1222_s28, 32, %s1224_s29, %s1209_s6  }
 0x1fb PF: > { %s1235_s24 = sand.u32 1, %s1593_s9   ;;  %p1351_p0 = pnand %p1319_p6, %p1762_p7 }
 0x1fc   : > { %s1236_s22 = scalar_lea.sflag [#allocation6], %s1235_s24 }
 0x1fd   : > { %p1352_p2 = pneg %p1351_p0 }
 0x1ff   : > { %1588 = dma.done.wait (%p1352_p2), %s1236_s22, 32  }
 0x200   : > { %1590 = vsyncadd (%p1352_p2), %s1236_s22, 4294967264  ;;  %s19_s14 = sadd.s32 1, %s1613_s14   ;;  %s2187_s9 = smov %s1597_s10 }
 0x201   : > { %p16_p5 = scmp.ge.s32.totalorder %s19_s14, 4   ;;  %s2188_s10 = smov %s1601_s11 }
 0x202   : > { %s2189_s11 = smov %s1760_s4  ;;  %s2190_s12 = smov %s1609_s13 }
 0x203   : > { %s2191_s13 = smov %s2193_s26  ;;  %18 = sbr.rel (!%p16_p5) target bundleno = 7 (0x7), region = 85 }
 0x208   :  { %1242 = vsyncpa [#allocation5], 1 }
 0x209   :  { %1244 = vsyncpa [#allocation5 + $0x1], 1 }
 0x20a   :  { %1245 = vsyncpa [#allocation8], 1 }
 0x20b   :  { %1246 = vsyncpa [#allocation6], 1 }
 0x20c   :  { %1248 = vsyncpa [#allocation6 + $0x1], 1 }

</bundles_post_ra>
